<compile_context>
chip_gen: v6e
topology: v6e:2x2x1
jax: 0.10.0
libtpu: 0.0.40
codegen_flags: <defaults>
</compile_context>

<pallas_src>
import functools

import jax
import jax.numpy as jnp
from jax import lax
from jax.experimental import pallas as pl
from jax.experimental.pallas import tpu as pltpu

LANE = 128
SUBLANE = 8


def _round_up(x, m):
    return ((x + m - 1) // m) * m


def _vmem_capacity_bytes():
    try:
        return int(pltpu.get_tpu_info().vmem_capacity_bytes)
    except Exception:
        return 64 << 20  # conservative default (v7x per-TC VMEM)


def _resident_spec(shape):
    """BlockSpec for an operand identical on every grid step (constant index_map).
    Single-buffered: the DMA already happens only once, so a second pipeline buffer
    would be pure wasted VMEM."""
    try:
        return pl.BlockSpec(shape, lambda i: (0,) * len(shape),
                            pipeline_mode=pl.Buffered(1))
    except TypeError:  # older jax without pipeline_mode kwarg
        return pl.BlockSpec(shape, lambda i: (0,) * len(shape))


# ---------------------------------------------------------------------------
# Fused kernel: x tile -> [matmul + bias + ReLU] * (n-1) -> matmul + bias -> out tile
# refs layout: (x_ref, w0, b0, w1, b1, ..., w_{n-1}, b_{n-1}, o_ref)
# ---------------------------------------------------------------------------
def _mlp_fused_kernel(x_ref, *refs, n_layers, compute_dtype, precision):
    o_ref = refs[-1]
    h = x_ref[...]
    for i in range(n_layers):
        w = refs[2 * i][...]
        b = refs[2 * i + 1][...]
        acc = jnp.dot(h.astype(compute_dtype), w.astype(compute_dtype),
                      preferred_element_type=jnp.float32,
                      precision=precision)                    # MXU, f32 accumulation
        acc = acc + b.astype(jnp.float32)                     # (tm, out) + (1, out), VPU
        if i < n_layers - 1:
            acc = jnp.maximum(acc, 0.0)                       # ReLU on hidden layers only
        h = acc
    o_ref[...] = h.astype(o_ref.dtype)


# ---------------------------------------------------------------------------
# Fallback: single Linear (+ optional ReLU) tiled over (M, N, K) -- used layer-by-layer
# only when the fused weight stack does not fit the per-chip VMEM budget.
# ---------------------------------------------------------------------------
def _linear_kernel(x_ref, w_ref, b_ref, o_ref, acc_ref, *, relu, compute_dtype, precision):
    k = pl.program_id(2)

    @pl.when(k == 0)
    def _():
        acc_ref[...] = jnp.zeros_like(acc_ref)

    acc_ref[...] += jnp.dot(x_ref[...].astype(compute_dtype),
                            w_ref[...].astype(compute_dtype),
                            preferred_element_type=jnp.float32,
                            precision=precision)

    @pl.when(k == pl.num_programs(2) - 1)
    def _():
        r = acc_ref[...] + b_ref[...].astype(jnp.float32)
        if relu:
            r = jnp.maximum(r, 0.0)
        o_ref[...] = r.astype(o_ref.dtype)


def _pick_feature_tile(dim, pref=512):
    for t in (pref, 512, 256, 128):
        if t <= dim and dim % t == 0:
            return t
    return dim


def _linear_tiled(x, w, b, *, relu, compute_dtype, precision, vmem_limit):
    M, K = x.shape
    _, N = w.shape
    tm = min(512, _round_up(M, SUBLANE))
    tk = _pick_feature_tile(K)
    tn = _pick_feature_tile(N)
    Mp = _round_up(M, tm)
    if Mp != M:
        x = jnp.zeros((Mp, K), x.dtype).at[:M].set(x)

    out = pl.pallas_call(
        functools.partial(_linear_kernel, relu=relu,
                          compute_dtype=compute_dtype, precision=precision),
        out_shape=jax.ShapeDtypeStruct((Mp, N), jnp.float32),
        grid=(Mp // tm, N // tn, K // tk),
        in_specs=[pl.BlockSpec((tm, tk), lambda i, j, k: (i, k)),
                  pl.BlockSpec((tk, tn), lambda i, j, k: (k, j)),
                  pl.BlockSpec((1, tn), lambda i, j, k: (0, j))],
        out_specs=pl.BlockSpec((tm, tn), lambda i, j, k: (i, j)),
        scratch_shapes=[pltpu.VMEM((tm, tn), jnp.float32)],
        compiler_params=pltpu.CompilerParams(
            dimension_semantics=("parallel", "parallel", "arbitrary"),
            vmem_limit_bytes=vmem_limit),
    )(x, w, b)
    return out[:M]


# ---------------------------------------------------------------------------
# MLP driver
# ---------------------------------------------------------------------------
def mlp_pallas(x2d, params, *, batch_tile=512, exact=False):
    """Fused MLP forward.

    x2d:    (B, in_dim) float32, in_dim <= padded in dim of first layer.
    params: list of (w, b); w:(in_p, out_p), b:(1, out_p), feature dims already
            multiples of 128 (lane-dense).  Weights may be bf16 (fast path) or f32.
    exact:  True -> f32 MXU with Precision.HIGHEST (PyTorch-float32 semantics);
            False -> bf16 MXU inputs, f32 accumulation (fast path, default).
    Returns (B, out_p) float32; caller slices the logical output columns.
    """
    B, in_dim = x2d.shape
    n_layers = len(params)
    in_p = params[0][0].shape[0]
    out_p = params[-1][0].shape[1]
    dims_p = [in_p] + [w.shape[1] for (w, _) in params]
    max_dim = max(dims_p)

    compute_dtype = jnp.float32 if exact else jnp.bfloat16
    precision = lax.Precision.HIGHEST if exact else None

    # --- batch tiling: minimal ghost rows + >=2 grid steps when possible (v7x megacore).
    Bp = _round_up(max(B, 1), SUBLANE)
    n_tiles = pl.cdiv(Bp, batch_tile)
    if Bp >= 2 * SUBLANE:
        n_tiles = max(n_tiles, 2)
    tm = _round_up(pl.cdiv(Bp, n_tiles), SUBLANE)
    n_tiles = pl.cdiv(Bp, tm)
    Bp = tm * n_tiles

    xp = jnp.zeros((Bp, in_p), jnp.float32).at[:B, :in_dim].set(x2d)

    # --- honest per-chip VMEM budget.
    wb_bytes = sum(w.size * w.dtype.itemsize + b.size * b.dtype.itemsize
                   for (w, b) in params)                     # single-buffered residents
    io_bytes = 2 * tm * (in_p + out_p) * 4                   # double-buffered x/out tiles
    act_bytes = 2 * tm * max_dim * 4                         # compiler-held intermediates
    est = wb_bytes + io_bytes + act_bytes
    usable = int(_vmem_capacity_bytes() * 0.85)              # headroom for Mosaic scratch
    vmem_limit = min(max(int(est * 1.25), 32 << 20), usable)

    if est > usable:
        # Weight stack does not fit VMEM (e.g. huge flattened input on v7x's 64 MiB/TC):
        # run layer-by-layer with a tiled matmul kernel; activations round-trip HBM but
        # each layer stays MXU-bound.
        h = xp
        for i, (w, b) in enumerate(params):
            h = _linear_tiled(h, w, b, relu=(i < n_layers - 1),
                              compute_dtype=compute_dtype, precision=precision,
                              vmem_limit=usable)
        return h[:B]

    # --- fused single pallas_call path.
    in_specs = [pl.BlockSpec((tm, in_p), lambda i: (i, 0))]
    flat_args = [xp]
    for (w, b) in params:
        in_specs.append(_resident_spec(w.shape))
        in_specs.append(_resident_spec(b.shape))
        flat_args += [w, b]
    out_specs = pl.BlockSpec((tm, out_p), lambda i: (i, 0))   # lane-dense (out_p % 128 == 0)

    flops = sum(2 * Bp * w.shape[0] * w.shape[1] for (w, _) in params)
    bytes_accessed = xp.size * 4 + Bp * out_p * 4 + wb_bytes
    cost = pl.CostEstimate(flops=flops, transcendentals=0, bytes_accessed=bytes_accessed)

    out = pl.pallas_call(
        functools.partial(_mlp_fused_kernel, n_layers=n_layers,
                          compute_dtype=compute_dtype, precision=precision),
        out_shape=jax.ShapeDtypeStruct((Bp, out_p), jnp.float32),
        grid=(n_tiles,),
        in_specs=in_specs,
        out_specs=out_specs,
        compiler_params=pltpu.CompilerParams(
            dimension_semantics=("parallel",),                # split batch across TCs on v7x
            vmem_limit_bytes=vmem_limit),
        cost_estimate=cost,
    )(*flat_args)
    return out[:B]


def init_mlp_params(key, input_dim, hiddens, output_dim, dtype=jnp.float32,
                    lane_multiple=LANE):
    """nn.Linear-style U(-1/sqrt(fan_in), 1/sqrt(fan_in)) init, stored as (in, out)/(1, out),
    zero-padded ONCE so every feature dim is a multiple of `lane_multiple`."""
    dims = [input_dim] + list(hiddens) + [output_dim]
    padded = [_round_up(d, lane_multiple) for d in dims]
    params = []
    for i in range(len(dims) - 1):
        fan_in, fan_out = dims[i], dims[i + 1]
        key, kw, kb = jax.random.split(key, 3)
        bound = 1.0 / (fan_in ** 0.5)
        w = jax.random.uniform(kw, (fan_in, fan_out), jnp.float32, -bound, bound)
        b = jax.random.uniform(kb, (1, fan_out), jnp.float32, -bound, bound)
        wp = jnp.zeros((padded[i], padded[i + 1]), dtype).at[:fan_in, :fan_out].set(
            w.astype(dtype))
        bp = jnp.zeros((1, padded[i + 1]), jnp.float32).at[:, :fan_out].set(b)
        params.append((wp, bp))
    return params


def to_fast_params(params):
    """bf16 weight storage (halves weight DMA from HBM); biases stay f32 for the epilogue."""
    return [(w.astype(jnp.bfloat16), b) for (w, b) in params]


def fully_connected_mlp_forward(x, params, output_dim, *, exact=False, batch_tile=512):
    """Matches FullyConnectedMLP.forward: flatten, run the MLP, view as (B, output_dim)."""
    batch_size = x.shape[0]
    x2d = x.reshape(batch_size, -1).astype(jnp.float32)       # x.view(batch_size, -1)
    out = mlp_pallas(x2d, params, batch_tile=batch_tile, exact=exact)
    return out[:, :output_dim].reshape(batch_size, output_dim)


if __name__ == "__main__":
    key = jax.random.PRNGKey(0)
    kx, kp = jax.random.split(key)

    # Example: input tensor (2, 4, 16) -> flattened input_dim = 64, hiddens = [32, 32], output_dim = 8
    batch = 2
    x = jax.random.normal(kx, (batch, 4, 16), dtype=jnp.float32)
    input_dim = 4 * 16
    hiddens = [32, 32]
    output_dim = 8

    params = init_mlp_params(kp, input_dim, hiddens, output_dim)        # f32 master copy
    params_fast = to_fast_params(params)                                # bf16 weights

    # --- exact path (f32 MXU, Precision.HIGHEST) ---------------------------------
    fwd_exact = jax.jit(functools.partial(fully_connected_mlp_forward,
                                          output_dim=output_dim, exact=True))
    out_exact = jax.block_until_ready(fwd_exact(x, params))
    assert out_exact.shape == (batch, output_dim)
    assert out_exact.dtype == jnp.float32

    # Pure-JAX reference on the (exactly equivalent) padded f32 params.
    xr = x.reshape(batch, -1)
    ref = jnp.zeros((batch, params[0][0].shape[0]), jnp.float32).at[:, :input_dim].set(xr)
    for i, (w, b) in enumerate(params):
        ref = jnp.dot(ref, w, precision=lax.Precision.HIGHEST) + b
        if i < len(params) - 1:
            ref = jnp.maximum(ref, 0.0)
    ref = ref[:, :output_dim]
    assert jnp.allclose(out_exact, ref, atol=1e-4, rtol=1e-4), "exact path mismatch vs reference"

    # --- fast path (bf16 weights / bf16 MXU inputs, f32 accumulation) ------------
    fwd_fast = jax.jit(functools.partial(fully_connected_mlp_forward,
                                         output_dim=output_dim, exact=False))
    out_fast = jax.block_until_ready(fwd_fast(x, params_fast))
    assert out_fast.shape == (batch, output_dim)

    # bf16-aware reference: weights rounded to bf16, f32 math elsewhere.
    refb = jnp.zeros((batch, params[0][0].shape[0]), jnp.float32).at[:, :input_dim].set(xr)
    for i, (w, b) in enumerate(params_fast):
        refb = jnp.dot(refb, w.astype(jnp.float32), precision=lax.Precision.HIGHEST) + b
        if i < len(params_fast) - 1:
            refb = jnp.maximum(refb, 0.0)
    refb = refb[:, :output_dim]
    assert jnp.allclose(out_fast, refb, atol=5e-2, rtol=5e-2), "bf16 fast path mismatch vs reference"

    print("KERNEL_OK")
</pallas_src>

<mosaic_0001>
module attributes {stable_mosaic.version = 11 : i64} {
  func.func @_mlp_fused_kernel(%arg0: i32, %arg1: memref<8x128xf32, #tpu.memory_space<vmem>>, %arg2: memref<128x128xf32, #tpu.memory_space<vmem>>, %arg3: memref<1x128xf32, #tpu.memory_space<vmem>>, %arg4: memref<128x128xf32, #tpu.memory_space<vmem>>, %arg5: memref<1x128xf32, #tpu.memory_space<vmem>>, %arg6: memref<128x128xf32, #tpu.memory_space<vmem>>, %arg7: memref<1x128xf32, #tpu.memory_space<vmem>>, %arg8: memref<8x128xf32, #tpu.memory_space<vmem>>) attributes {dimension_semantics = [#tpu.dimension_semantics<parallel>], iteration_bounds = array<i64: 1>, scalar_prefetch = 0 : i64, scratch_operands = 0 : i64, tpu.core_type = #tpu.core_type<tc>, window_params = [{transform_indices = @transform_0, window_bounds = array<i64: 8, 128>}, {pipeline_mode = #tpu.pipeline_mode<synchronous>, transform_indices = @transform_1, window_bounds = array<i64: 128, 128>}, {pipeline_mode = #tpu.pipeline_mode<synchronous>, transform_indices = @transform_2, window_bounds = array<i64: 1, 128>}, {pipeline_mode = #tpu.pipeline_mode<synchronous>, transform_indices = @transform_3, window_bounds = array<i64: 128, 128>}, {pipeline_mode = #tpu.pipeline_mode<synchronous>, transform_indices = @transform_4, window_bounds = array<i64: 1, 128>}, {pipeline_mode = #tpu.pipeline_mode<synchronous>, transform_indices = @transform_5, window_bounds = array<i64: 128, 128>}, {pipeline_mode = #tpu.pipeline_mode<synchronous>, transform_indices = @transform_6, window_bounds = array<i64: 1, 128>}, {transform_indices = @transform_7, window_bounds = array<i64: 8, 128>}]} {
    %c0 = arith.constant 0 : index
    %c0_0 = arith.constant 0 : index
    %0 = vector.load %arg1[%c0, %c0_0] : memref<8x128xf32, #tpu.memory_space<vmem>>, vector<8x128xf32>
    %c0_1 = arith.constant 0 : index
    %c0_2 = arith.constant 0 : index
    %1 = vector.load %arg2[%c0_1, %c0_2] : memref<128x128xf32, #tpu.memory_space<vmem>>, vector<128x128xf32>
    %c0_3 = arith.constant 0 : index
    %c0_4 = arith.constant 0 : index
    %2 = vector.load %arg3[%c0_3, %c0_4] : memref<1x128xf32, #tpu.memory_space<vmem>>, vector<1x128xf32>
    %cst = arith.constant dense<0.000000e+00> : vector<8x128xf32>
    %3 = tpu.matmul %0, %1, %cst {dimension_numbers = #tpu.dot_dimension_numbers<[1], [0], [0], [1], [0, 0, 1, 1], [], []>, precision = #tpu.contract_precision<fp32>} : vector<8x128xf32>, vector<128x128xf32>, vector<8x128xf32> -> vector<8x128xf32>
    %4 = vector.broadcast %2 : vector<1x128xf32> to vector<8x128xf32>
    %5 = arith.addf %3, %4 : vector<8x128xf32>
    %cst_5 = arith.constant 0.000000e+00 : f32
    %6 = vector.broadcast %cst_5 : f32 to vector<8x128xf32>
    %7 = arith.maximumf %5, %6 : vector<8x128xf32>
    %c0_6 = arith.constant 0 : index
    %c0_7 = arith.constant 0 : index
    %8 = vector.load %arg4[%c0_6, %c0_7] : memref<128x128xf32, #tpu.memory_space<vmem>>, vector<128x128xf32>
    %c0_8 = arith.constant 0 : index
    %c0_9 = arith.constant 0 : index
    %9 = vector.load %arg5[%c0_8, %c0_9] : memref<1x128xf32, #tpu.memory_space<vmem>>, vector<1x128xf32>
    %cst_10 = arith.constant dense<0.000000e+00> : vector<8x128xf32>
    %10 = tpu.matmul %7, %8, %cst_10 {dimension_numbers = #tpu.dot_dimension_numbers<[1], [0], [0], [1], [0, 0, 1, 1], [], []>, precision = #tpu.contract_precision<fp32>} : vector<8x128xf32>, vector<128x128xf32>, vector<8x128xf32> -> vector<8x128xf32>
    %11 = vector.broadcast %9 : vector<1x128xf32> to vector<8x128xf32>
    %12 = arith.addf %10, %11 : vector<8x128xf32>
    %cst_11 = arith.constant 0.000000e+00 : f32
    %13 = vector.broadcast %cst_11 : f32 to vector<8x128xf32>
    %14 = arith.maximumf %12, %13 : vector<8x128xf32>
    %c0_12 = arith.constant 0 : index
    %c0_13 = arith.constant 0 : index
    %15 = vector.load %arg6[%c0_12, %c0_13] : memref<128x128xf32, #tpu.memory_space<vmem>>, vector<128x128xf32>
    %c0_14 = arith.constant 0 : index
    %c0_15 = arith.constant 0 : index
    %16 = vector.load %arg7[%c0_14, %c0_15] : memref<1x128xf32, #tpu.memory_space<vmem>>, vector<1x128xf32>
    %cst_16 = arith.constant dense<0.000000e+00> : vector<8x128xf32>
    %17 = tpu.matmul %14, %15, %cst_16 {dimension_numbers = #tpu.dot_dimension_numbers<[1], [0], [0], [1], [0, 0, 1, 1], [], []>, precision = #tpu.contract_precision<fp32>} : vector<8x128xf32>, vector<128x128xf32>, vector<8x128xf32> -> vector<8x128xf32>
    %18 = vector.broadcast %16 : vector<1x128xf32> to vector<8x128xf32>
    %19 = arith.addf %17, %18 : vector<8x128xf32>
    %c0_17 = arith.constant 0 : index
    %c0_18 = arith.constant 0 : index
    %20 = vector.load %arg8[%c0_17, %c0_18] : memref<8x128xf32, #tpu.memory_space<vmem>>, vector<8x128xf32>
    tpu.vector_store %arg8[%c0_17, %c0_18], %19 {strides = array<i32>} : memref<8x128xf32, #tpu.memory_space<vmem>>, vector<8x128xf32>,
    return
  }
  func.func @transform_0(%arg0: i32) -> (i32, i32) {
    %c0_i32 = arith.constant 0 : i32
    %c0_i32_0 = arith.constant 0 : i32
    return %arg0, %c0_i32 : i32, i32
  }
  func.func @transform_1(%arg0: i32) -> (i32, i32) {
    %c0_i32 = arith.constant 0 : i32
    %c0_i32_0 = arith.constant 0 : i32
    %c0_i32_1 = arith.constant 0 : i32
    return %c0_i32, %c0_i32_0 : i32, i32
  }
  func.func @transform_2(%arg0: i32) -> (i32, i32) {
    %c0_i32 = arith.constant 0 : i32
    %c0_i32_0 = arith.constant 0 : i32
    %c0_i32_1 = arith.constant 0 : i32
    return %c0_i32, %c0_i32_0 : i32, i32
  }
  func.func @transform_3(%arg0: i32) -> (i32, i32) {
    %c0_i32 = arith.constant 0 : i32
    %c0_i32_0 = arith.constant 0 : i32
    %c0_i32_1 = arith.constant 0 : i32
    return %c0_i32, %c0_i32_0 : i32, i32
  }
  func.func @transform_4(%arg0: i32) -> (i32, i32) {
    %c0_i32 = arith.constant 0 : i32
    %c0_i32_0 = arith.constant 0 : i32
    %c0_i32_1 = arith.constant 0 : i32
    return %c0_i32, %c0_i32_0 : i32, i32
  }
  func.func @transform_5(%arg0: i32) -> (i32, i32) {
    %c0_i32 = arith.constant 0 : i32
    %c0_i32_0 = arith.constant 0 : i32
    %c0_i32_1 = arith.constant 0 : i32
    return %c0_i32, %c0_i32_0 : i32, i32
  }
  func.func @transform_6(%arg0: i32) -> (i32, i32) {
    %c0_i32 = arith.constant 0 : i32
    %c0_i32_0 = arith.constant 0 : i32
    %c0_i32_1 = arith.constant 0 : i32
    return %c0_i32, %c0_i32_0 : i32, i32
  }
  func.func @transform_7(%arg0: i32) -> (i32, i32) {
    %c0_i32 = arith.constant 0 : i32
    %c0_i32_0 = arith.constant 0 : i32
    return %arg0, %c0_i32 : i32, i32
  }
}

</mosaic_0001>

<bundles_post_ra>
// kernel: fully_connected_mlp_forward.1
= control target key start
LH: loop header
LB: loop body
LE: loop exit
PB: predicated region body
PF: predicated region fallthrough
CT: control target
= control target key end

     0   :  { %12 = vsyncpa [#allocation3], 0  ;;  %s4231_s0 = inlined_call_operand.vmem [shape: f32[8,128], index: 0, kind: input, shape index: {}]   ;;  %s4232_s1 = inlined_call_operand.hbm [shape: f32[128,128], index: 1, kind: input, shape index: {}]   ;;  %s4233_s2 = inlined_call_operand.vmem [shape: f32[1,128], index: 2, kind: input, shape index: {}]   ;;  %s4234_s3 = inlined_call_operand.hbm [shape: f32[128,128], index: 3, kind: input, shape index: {}]   ;;  %s4235_s4 = inlined_call_operand.vmem [shape: f32[1,128], index: 4, kind: input, shape index: {}]   ;;  %s4236_s5 = inlined_call_operand.hbm [shape: f32[128,128], index: 5, kind: input, shape index: {}]   ;;  %s4237_s6 = inlined_call_operand.vmem [shape: f32[1,128], index: 6, kind: input, shape index: {}]   ;;  %s4238_s7 = inlined_call_operand.vmem [shape: f32[8,128], index: 7, kind: output, shape index: {}]  }
   0x1   :  { %13 = vsyncpa [#allocation5], 0  ;;  %s3079_s24 = smov [#allocation4]   ;;  %s3080_s26 = smov [#allocation2]  }
   0x2   :  { %s35_s25 = sshll.u32 %s3079_s24, 4  ;;  %s21_s27 = sshll.u32 %s3080_s26, 4  ;;  %s36_s25 = int_to_ptr.vmem [resolvable:$true] %s35_s25  ;;  %s22_s27 = int_to_ptr.vmem [resolvable:$true] %s21_s27 }
   0x3   :  { %s3023_s28 = scalar_lea.vmem %s36_s25, 2048  ;;  %p3028_p1 = scmp.lt.s32.totalorder %s36_s25, %s36_s25 }
   0x4   :  { %p3024_p0 = scmp.ne.s32.totalorder %s36_s25, %s3023_s28  ;;  %p3029_p2 = scmp.lt.s32.totalorder %s3023_s28, %s3023_s28 }
   0x6   :  { %p3030_p3 = por %p3029_p2, %p3028_p1 }
   0x8   :  { %p3031_p4 = pnand %p3030_p3, %p3024_p0 }
   0xa   :  { %3034 = shalt.err (!%p3031_p4)
}
   0xb   :  { %s3081_s29 = smov 128   ;;  %s3082_s30 = smov 8  }
   0xc   :  { %41 = dma.hbm_to_vmem [thread:$0]  %s4234_s3, 2048, %s36_s25, [#allocation5], %s3081_s29, %s3081_s29, %s3082_s30  }
   0xd   :  { %s3043_s10 = scalar_lea.vmem %s22_s27, 2048  ;;  %p3048_p6 = scmp.lt.s32.totalorder %s22_s27, %s22_s27 }
   0xe   :  { %p3044_p5 = scmp.ne.s32.totalorder %s22_s27, %s3043_s10  ;;  %p3049_p7 = scmp.lt.s32.totalorder %s3043_s10, %s3043_s10 }
  0x10   :  { %p3050_p8 = por %p3049_p7, %p3048_p6 }
  0x12   :  { %p3051_p9 = pnand %p3050_p8, %p3044_p5 }
  0x14   :  { %3054 = shalt.err (!%p3051_p9)
}
  0x15   :  { %27 = dma.hbm_to_vmem [thread:$0]  %s4232_s1, 2048, %s22_s27, [#allocation3], %s3081_s29, %s3081_s29, %s3082_s30  }
  0x16   :  { %s3083_s13 = smov [#allocation6]  }
  0x17   :  { %s49_s14 = sshll.u32 %s3083_s13, 4  ;;  %s50_s14 = int_to_ptr.vmem [resolvable:$true] %s49_s14 }
  0x18   :  { %s3063_s15 = scalar_lea.vmem %s50_s14, 2048  ;;  %p3068_p11 = scmp.lt.s32.totalorder %s50_s14, %s50_s14 }
  0x19   :  { %p3064_p10 = scmp.ne.s32.totalorder %s50_s14, %s3063_s15  ;;  %p3069_p12 = scmp.lt.s32.totalorder %s3063_s15, %s3063_s15 }
  0x1b   :  { %p3070_p13 = por %p3069_p12, %p3068_p11 }
  0x1d   :  { %p3071_p0 = pnand %p3070_p13, %p3064_p10 }
  0x1f   :  { %3074 = shalt.err (!%p3071_p0)
}
  0x20   :  { %55 = dma.hbm_to_vmem [thread:$0]  %s4236_s5, 2048, %s50_s14, [#allocation5], %s3081_s29, %s3081_s29, %s3082_s30  }
  0x21   :  { %3075 = dma.done.wait [#allocation3], 2048  }
  0x22   :  { %3076 = vsyncadd [#allocation3], 4294965248 }
  0x23   :  { %3077 = dma.done.wait [#allocation5], 4096  }
  0x24   :  { %3078 = vsyncadd [#allocation5], 4294963200  ;;  %v3084_v0 = vmov 0.0   ;;  %vm3085_vm0 = vmmov 0   ;;  %v83_v1 = vld [vmem:[#allocation2 + $0x78] sm:$0xff]  ;;  %v82_v2 = vld [vmem:[#allocation2 + $0x70] sm:$0xff] }
  0x25   :  { %2378 = vmatprep.subr.mxu0 %v3084_v0  ;;  %2413 = vmatprep.subr.mxu1 %v3084_v0  ;;  %v81_v3 = vld [vmem:[#allocation2 + $0x68] sm:$0xff]  ;;  %v3141_v4 = vand.u32 4294901760, %v83_v1  ;;  %v3143_v5 = vand.u32 4294901760, %v82_v2  ;;  %v80_v7 = vld [vmem:[#allocation2 + $0x60] sm:$0xff]  ;;  %v79_v8 = vld [vmem:[#allocation2 + $0x58] sm:$0xff] }
  0x26   :  { %2410 = vmatprep.mubr.msk.f32.mxu0 %vm3085_vm0, %v3084_v0  ;;  %2445 = vmatprep.mubr.msk.f32.mxu1 %vm3085_vm0, %v3084_v0  ;;  %v3145_v6 = vand.u32 4294901760, %v81_v3  ;;  %v78_v9 = vld [vmem:[#allocation2 + $0x50] sm:$0xff]  ;;  %v3147_v10 = vand.u32 4294901760, %v80_v7  ;;  %v3149_v11 = vand.u32 4294901760, %v79_v8  ;;  %v77_v13 = vld [vmem:[#allocation2 + $0x48] sm:$0xff]  ;;  %v76_v14 = vld [vmem:[#allocation2 + $0x40] sm:$0xff] }
  0x27   :  { %v3151_v12 = vand.u32 4294901760, %v78_v9  ;;  %2379 = vmatpush3.msra.mxu0 %v3141_v4  ;;  %v3155_v15 = vsub.f32 %v83_v1, %v3141_v4  ;;  %v3158_v16 = vsub.f32 %v82_v2, %v3143_v5  ;;  %v3160_v17 = vand.u32 4294901760, %v77_v13  ;;  %v75_v19 = vld [vmem:[#allocation2 + $0x38] sm:$0xff]  ;;  %v74_v26 = vld [vmem:[#allocation2 + $0x30] sm:$0xff]  ;;  %v73_v36 = vld [vmem:[#allocation2 + $0x28] sm:$0xff] }
  0x28   :  { %v3163_v18 = vsub.f32 %v81_v3, %v3145_v6  ;;  %2380 = vmatprep.subr.mxu0 %v3084_v0  ;;  %v3167_v20 = vsub.f32 %v80_v7, %v3147_v10  ;;  %v3170_v21 = vsub.f32 %v79_v8, %v3149_v11  ;;  %v3176_v25 = vand.u32 4294901760, %v76_v14  ;;  %v72_v41 = vld [vmem:[#allocation2 + $0x20] sm:$0xff]  ;;  %v71_v49 = vld [vmem:[#allocation2 + $0x18] sm:$0xff]  ;;  %v70_v54 = vld [vmem:[#allocation2 + $0x10] sm:$0xff] }
  0x29   :  { %2381 = vmatpush3.msra.mxu0 %v3143_v5  ;;  %v185_v22 = vand.u32 4294901760, %v3155_v15  ;;  %v192_v23 = vand.u32 4294901760, %v3158_v16  ;;  %v3180_v28 = vand.u32 4294901760, %v75_v19  ;;  %v3184_v30 = vsub.f32 %v78_v9, %v3151_v12  ;;  %v67_v50 = vld [vmem:[%s4231_s0] sm:$0xff]  ;;  %v69_v60 = vld [vmem:[#allocation2 + $0x8] sm:$0xff] }
  0x2a   :  { %v199_v24 = vand.u32 4294901760, %v3163_v18  ;;  %2382 = vmatprep.subr.mxu0 %v3084_v0  ;;  %v206_v27 = vand.u32 4294901760, %v3167_v20  ;;  %v213_v29 = vand.u32 4294901760, %v3170_v21  ;;  %v3197_v34 = vsub.f32 %v77_v13, %v3160_v17  ;;  %v68_v7 = vld [vmem:[#allocation2] sm:$0xff] }
  0x2b   :  { %2383 = vmatpush3.msra.mxu0 %v3145_v6  ;;  %v186_v31 = vsub.f32 %v3155_v15, %v185_v22  ;;  %v193_v32 = vsub.f32 %v3158_v16, %v192_v23  ;;  %v3200_v35 = vand.u32 4294901760, %v74_v26  ;;  %v220_v40 = vand.u32 4294901760, %v3184_v30 }
  0x2c   :  { %v200_v33 = vsub.f32 %v3163_v18, %v199_v24  ;;  %2384 = vmatprep.subr.mxu0 %v3084_v0  ;;  %v207_v39 = vsub.f32 %v3167_v20, %v206_v27  ;;  %v214_v42 = vsub.f32 %v3170_v21, %v213_v29  ;;  %v3212_v43 = vsub.f32 %v76_v14, %v3176_v25 }
  0x2d   :  { %2385 = vmatpush3.msra.mxu0 %v3147_v10  ;;  %v187_v37 = vand.u32 4294901760, %v186_v31  ;;  %v194_v38 = vand.u32 4294901760, %v193_v32  ;;  %v3215_v45 = vand.u32 4294901760, %v73_v36  ;;  %v227_v46 = vand.u32 4294901760, %v3197_v34 }
  0x2e   :  { %2386 = vmatprep.subr.mxu0 %v3084_v0  ;;  %v201_v44 = vand.u32 4294901760, %v200_v33  ;;  %v3219_v47 = vsub.f32 %v75_v19, %v3180_v28  ;;  %v3223_v48 = vand.u32 4294901760, %v72_v41  ;;  %v208_v51 = vand.u32 4294901760, %v207_v39 }
  0x2f   :  { %2387 = vmatpush3.msra.mxu0 %v3149_v11  ;;  %2414 = vmatpush3.msra.mxu1 %v187_v37  ;;  %v221_v52 = vsub.f32 %v3184_v30, %v220_v40  ;;  %v234_v53 = vand.u32 4294901760, %v3212_v43  ;;  %v3234_v55 = vsub.f32 %v74_v26, %v3200_v35  ;;  %v215_v56 = vand.u32 4294901760, %v214_v42 }
  0x30   :  { %2388 = vmatprep.subr.mxu0 %v3084_v0  ;;  %2415 = vmatprep.subr.mxu1 %v3084_v0  ;;  %v241_v57 = vand.u32 4294901760, %v3219_v47  ;;  %v228_v58 = vsub.f32 %v3197_v34, %v227_v46  ;;  %v3243_v59 = vand.u32 4294901760, %v71_v49  ;;  %v3246_v61 = vsub.f32 %v73_v36, %v3215_v45 }
  0x31   :  { %2389 = vmatpush3.msra.mxu0 %v3151_v12  ;;  %2416 = vmatpush3.msra.mxu1 %v194_v38  ;;  %v3248_v62 = vand.u32 4294901760, %v67_v50  ;;  %v3252_v63 = vand.u32 4294901760, %v70_v54  ;;  %v222_v1 = vand.u32 4294901760, %v221_v52  ;;  %v235_v2 = vsub.f32 %v3212_v43, %v234_v53 }
  0x32   :  { %2390 = vmatprep.subr.mxu0 %v3084_v0  ;;  %2417 = vmatprep.subr.mxu1 %v3084_v0  ;;  %v248_v3 = vand.u32 4294901760, %v3234_v55  ;;  %v3260_v8 = vsub.f32 %v72_v41, %v3223_v48  ;;  %v242_v9 = vsub.f32 %v3219_v47, %v241_v57  ;;  %v3267_v13 = vand.u32 4294901760, %v69_v60 }
  0x33   :  { %2391 = vmatpush3.msra.mxu0 %v3160_v17  ;;  %2418 = vmatpush3.msra.mxu1 %v201_v44  ;;  %v229_v14 = vand.u32 4294901760, %v228_v58  ;;  %v255_v19 = vand.u32 4294901760, %v3246_v61  ;;  %v3272_v26 = vsub.f32 %v67_v50, %v3248_v62  ;;  %v3275_v31 = vsub.f32 %v71_v49, %v3243_v59 }
  0x34   :  { %2392 = vmatprep.subr.mxu0 %v3084_v0  ;;  %2419 = vmatprep.subr.mxu1 %v3084_v0  ;;  %v3279_v32 = vand.u32 4294901760, %v68_v7  ;;  %v236_v33 = vand.u32 4294901760, %v235_v2  ;;  %v249_v36 = vsub.f32 %v3234_v55, %v248_v3  ;;  %v262_v37 = vand.u32 4294901760, %v3260_v8 }
  0x35   :  { %2393 = vmatpush3.msra.mxu0 %v3176_v25  ;;  %2420 = vmatpush3.msra.mxu1 %v208_v51  ;;  %v3287_v38 = vsub.f32 %v70_v54, %v3252_v63  ;;  %v243_v39 = vand.u32 4294901760, %v242_v9  ;;  %v256_v41 = vsub.f32 %v3246_v61, %v255_v19  ;;  %v174_v42 = vand.u32 4294901760, %v3272_v26 }
  0x36   :  { %2394 = vmatprep.subr.mxu0 %v3084_v0  ;;  %2421 = vmatprep.subr.mxu1 %v3084_v0  ;;  %v269_v44 = vand.u32 4294901760, %v3275_v31  ;;  %v3298_v49 = vsub.f32 %v69_v60, %v3267_v13  ;;  %v250_v50 = vand.u32 4294901760, %v249_v36  ;;  %v263_v51 = vsub.f32 %v3260_v8, %v262_v37 }
  0x37   :  { %2395 = vmatpush3.msra.mxu0 %v3180_v28  ;;  %2422 = vmatpush3.msra.mxu1 %v215_v56  ;;  %v276_v52 = vand.u32 4294901760, %v3287_v38  ;;  %v3308_v54 = vsub.f32 %v68_v7, %v3279_v32  ;;  %v257_v56 = vand.u32 4294901760, %v256_v41  ;;  %v175_v58 = vsub.f32 %v3272_v26, %v174_v42 }
  0x38   :  { %2396 = vmatprep.subr.mxu0 %v3084_v0  ;;  %2423 = vmatprep.subr.mxu1 %v3084_v0  ;;  %v270_v60 = vsub.f32 %v3275_v31, %v269_v44  ;;  %v264_v2 = vand.u32 4294901760, %v263_v51 }
  0x39   :  { %2397 = vmatpush3.msra.mxu0 %v3200_v35  ;;  %2424 = vmatpush3.msra.mxu1 %v222_v1  ;;  %v283_v1 = vand.u32 4294901760, %v3298_v49  ;;  %v277_v7 = vsub.f32 %v3287_v38, %v276_v52  ;;  %v290_v9 = vand.u32 4294901760, %v3308_v54 }
  0x3a   :  { %2398 = vmatprep.subr.mxu0 %v3084_v0  ;;  %2425 = vmatprep.subr.mxu1 %v3084_v0 }
  0x3b   :  { %2399 = vmatpush3.msra.mxu0 %v3215_v45  ;;  %2426 = vmatpush3.msra.mxu1 %v229_v14  ;;  %v176_v14 = vand.u32 4294901760, %v175_v58  ;;  %v284_v36 = vsub.f32 %v3298_v49, %v283_v1  ;;  %v291_v41 = vsub.f32 %v3308_v54, %v290_v9  ;;  %v739_v58 = vld [vmem:[#allocation4 + $0x30] sm:$0xff] }
  0x3c   :  { %2400 = vmatprep.subr.mxu0 %v3084_v0  ;;  %2427 = vmatprep.subr.mxu1 %v3084_v0 }
  0x3d   :  { %2401 = vmatpush3.msra.mxu0 %v3223_v48  ;;  %2428 = vmatpush3.msra.mxu1 %v236_v33  ;;  %v271_v33 = vand.u32 4294901760, %v270_v60  ;;  %v292_v51 = vand.u32 4294901760, %v291_v41 }
  0x3e   :  { %2402 = vmatprep.subr.mxu0 %v3084_v0  ;;  %2429 = vmatprep.subr.mxu1 %v3084_v0 }
  0x3f   :  { %2403 = vmatpush3.msra.mxu0 %v3243_v59  ;;  %2430 = vmatpush3.msra.mxu1 %v243_v39  ;;  %v278_v39 = vand.u32 4294901760, %v277_v7  ;;  %v738_v7 = vld [vmem:[#allocation4 + $0x28] sm:$0xff] }
  0x40   :  { %2404 = vmatprep.subr.mxu0 %v3084_v0  ;;  %2431 = vmatprep.subr.mxu1 %v3084_v0 }
  0x41   :  { %2405 = vmatpush3.msra.mxu0 %v3252_v63  ;;  %2432 = vmatpush3.msra.mxu1 %v250_v50  ;;  %v285_v50 = vand.u32 4294901760, %v284_v36  ;;  %v737_v36 = vld [vmem:[#allocation4 + $0x20] sm:$0xff] }
  0x42   :  { %2406 = vmatprep.subr.mxu0 %v3084_v0  ;;  %2433 = vmatprep.subr.mxu1 %v3084_v0 }
  0x43   :  { %2407 = vmatpush3.msra.mxu0 %v3267_v13  ;;  %2434 = vmatpush3.msra.mxu1 %v257_v56 }
  0x44   :  { %2408 = vmatprep.subr.mxu0 %v3084_v0  ;;  %2435 = vmatprep.subr.mxu1 %v3084_v0 }
  0x45   :  { %2409 = vmatpush3.msra.mxu0 %v3279_v32  ;;  %2436 = vmatpush3.msra.mxu1 %v264_v2  ;;  %v3607_v2 = vand.u32 4294901760, %v739_v58 }
  0x46   :  { %2437 = vmatprep.subr.mxu1 %v3084_v0  ;;  %2448 = vmatprep.subr.mxu0 %v3084_v0 }
  0x47   :  { %2411 = vmatmul.mubr.f32.vlgmr.msra.gmra.mxu0 %v176_v14  ;;  %2438 = vmatpush3.msra.mxu1 %v271_v33  ;;  %v3613_v14 = vsub.f32 %v739_v58, %v3607_v2  ;;  %v3615_v33 = vand.u32 4294901760, %v738_v7 }
  0x48   :  { %2449 = vmatpush3.msra.mxu0 %v3155_v15  ;;  %2439 = vmatprep.subr.mxu1 %v3084_v0  ;;  %v745_v15 = vld [vmem:[#allocation4 + $0x60] sm:$0xff] }
  0x49   :  { %2450 = vmatprep.subr.mxu0 %v3084_v0  ;;  %2440 = vmatpush3.msra.mxu1 %v278_v39  ;;  %v913_v41 = vand.u32 4294901760, %v3613_v14 }
  0x4a   :  { %2451 = vmatpush3.msra.mxu0 %v3158_v16  ;;  %2441 = vmatprep.subr.mxu1 %v3084_v0  ;;  %v744_v16 = vld [vmem:[#allocation4 + $0x58] sm:$0xff] }
  0x4b   :  { %2452 = vmatprep.subr.mxu0 %v3084_v0  ;;  %2442 = vmatpush3.msra.mxu1 %v285_v50  ;;  %v3622_v50 = vsub.f32 %v738_v7, %v3615_v33 }
  0x4c   :  { %2453 = vmatpush3.msra.mxu0 %v3163_v18  ;;  %2443 = vmatprep.subr.mxu1 %v3084_v0 }
  0x4d   :  { %2454 = vmatprep.subr.mxu0 %v3084_v0  ;;  %2444 = vmatpush3.msra.mxu1 %v292_v51  ;;  %v3624_v51 = vand.u32 4294901760, %v737_v36 }
  0x4e   :  { %2455 = vmatpush3.msra.mxu0 %v3167_v20  ;;  %2446 = vmatmul.mubr.f32.vlgmr.msra.gmra.mxu1 %v3248_v62 }
  0x4f   :  { %2456 = vmatprep.subr.mxu0 %v3084_v0  ;;  %2483 = vmatprep.subr.mxu1 %v3084_v0 }
  0x50   :  { %2457 = vmatpush3.msra.mxu0 %v3170_v21  ;;  %2484 = vmatpush3.msra.mxu1 %v3141_v4  ;;  %v3522_v21 = vand.u32 4294901760, %v745_v15 }
  0x51   :  { %2458 = vmatprep.subr.mxu0 %v3084_v0  ;;  %2485 = vmatprep.subr.mxu1 %v3084_v0 }
  0x52   :  { %2459 = vmatpush3.msra.mxu0 %v3184_v30  ;;  %2486 = vmatpush3.msra.mxu1 %v3143_v5 }
  0x53   :  { %2460 = vmatprep.subr.mxu0 %v3084_v0  ;;  %2487 = vmatprep.subr.mxu1 %v3084_v0 }
  0x54   :  { %2461 = vmatpush3.msra.mxu0 %v3197_v34  ;;  %2488 = vmatpush3.msra.mxu1 %v3145_v6 }
  0x55   :  { %2462 = vmatprep.subr.mxu0 %v3084_v0  ;;  %2489 = vmatprep.subr.mxu1 %v3084_v0 }
  0x56   :  { %2463 = vmatpush3.msra.mxu0 %v3212_v43  ;;  %2490 = vmatpush3.msra.mxu1 %v3147_v10 }
  0x57   :  { %2464 = vmatprep.subr.mxu0 %v3084_v0  ;;  %2491 = vmatprep.subr.mxu1 %v3084_v0 }
  0x58   :  { %2465 = vmatpush3.msra.mxu0 %v3219_v47  ;;  %2492 = vmatpush3.msra.mxu1 %v3149_v11 }
  0x59   :  { %2466 = vmatprep.subr.mxu0 %v3084_v0  ;;  %2493 = vmatprep.subr.mxu1 %v3084_v0 }
  0x5a   :  { %2467 = vmatpush3.msra.mxu0 %v3234_v55  ;;  %2494 = vmatpush3.msra.mxu1 %v3151_v12 }
  0x5b   :  { %2468 = vmatprep.subr.mxu0 %v3084_v0  ;;  %2495 = vmatprep.subr.mxu1 %v3084_v0 }
  0x5c   :  { %2469 = vmatpush3.msra.mxu0 %v3246_v61  ;;  %2496 = vmatpush3.msra.mxu1 %v3160_v17 }
  0x5d   :  { %2470 = vmatprep.subr.mxu0 %v3084_v0  ;;  %2497 = vmatprep.subr.mxu1 %v3084_v0 }
  0x5e   :  { %2471 = vmatpush3.msra.mxu0 %v3260_v8  ;;  %2498 = vmatpush3.msra.mxu1 %v3176_v25 }
  0x5f   :  { %2472 = vmatprep.subr.mxu0 %v3084_v0  ;;  %2499 = vmatprep.subr.mxu1 %v3084_v0 }
  0x60   :  { %2473 = vmatpush3.msra.mxu0 %v3275_v31  ;;  %2500 = vmatpush3.msra.mxu1 %v3180_v28 }
  0x61   :  { %2474 = vmatprep.subr.mxu0 %v3084_v0  ;;  %2501 = vmatprep.subr.mxu1 %v3084_v0 }
  0x62   :  { %2475 = vmatpush3.msra.mxu0 %v3287_v38  ;;  %2502 = vmatpush3.msra.mxu1 %v3200_v35 }
  0x63   :  { %2476 = vmatprep.subr.mxu0 %v3084_v0  ;;  %2503 = vmatprep.subr.mxu1 %v3084_v0 }
  0x64   :  { %2477 = vmatpush3.msra.mxu0 %v3298_v49  ;;  %2504 = vmatpush3.msra.mxu1 %v3215_v45 }
  0x65   :  { %2478 = vmatprep.subr.mxu0 %v3084_v0  ;;  %2505 = vmatprep.subr.mxu1 %v3084_v0 }
  0x66   :  { %2479 = vmatpush3.msra.mxu0 %v3308_v54  ;;  %2480 = vmatprep.mubr.msk.f32.mxu0 %vm3085_vm0, %v3084_v0 }
  0x67   :  { %2506 = vmatpush3.msra.mxu1 %v3223_v48  ;;  %2481 = vmatmul.mubr.f32.vlgmr.msra.gmra.mxu0 %v3272_v26 }
  0x68   :  { %2507 = vmatprep.subr.mxu1 %v3084_v0  ;;  %2518 = vmatprep.subr.mxu0 %v3084_v0 }
  0x69   :  { %2508 = vmatpush3.msra.mxu1 %v3243_v59  ;;  %2519 = vmatpush3.msra.mxu0 %v185_v22  ;;  %v743_v22 = vld [vmem:[#allocation4 + $0x50] sm:$0xff] }
  0x6a   :  { %2509 = vmatprep.subr.mxu1 %v3084_v0  ;;  %2520 = vmatprep.subr.mxu0 %v3084_v0 }
  0x6b   :  { %2510 = vmatpush3.msra.mxu1 %v3252_v63  ;;  %2521 = vmatpush3.msra.mxu0 %v192_v23  ;;  %v742_v23 = vld [vmem:[#allocation4 + $0x48] sm:$0xff] }
  0x6c   :  { %2511 = vmatprep.subr.mxu1 %v3084_v0  ;;  %2522 = vmatprep.subr.mxu0 %v3084_v0 }
  0x6d   :  { %2512 = vmatpush3.msra.mxu1 %v3267_v13  ;;  %2523 = vmatpush3.msra.mxu0 %v199_v24  ;;  %v741_v24 = vld [vmem:[#allocation4 + $0x40] sm:$0xff] }
  0x6e   :  { %2513 = vmatprep.subr.mxu1 %v3084_v0  ;;  %2524 = vmatprep.subr.mxu0 %v3084_v0 }
  0x6f   :  { %2514 = vmatpush3.msra.mxu1 %v3279_v32  ;;  %2515 = vmatprep.mubr.msk.f32.mxu1 %vm3085_vm0, %v3084_v0 }
  0x70   :  { %2525 = vmatpush3.msra.mxu0 %v206_v27  ;;  %2516 = vmatmul.mubr.f32.vlgmr.msra.gmra.mxu1 %v174_v42  ;;  %v3527_v27 = vand.u32 4294901760, %v743_v22 }
  0x71   :  { %2526 = vmatprep.subr.mxu0 %v3084_v0  ;;  %2553 = vmatprep.subr.mxu1 %v3084_v0 }
  0x72   :  { %2527 = vmatpush3.msra.mxu0 %v213_v29  ;;  %2554 = vmatpush3.msra.mxu1 %v3141_v4  ;;  %v748_v4 = vld [vmem:[#allocation4 + $0x78] sm:$0xff]  ;;  %v3532_v29 = vand.u32 4294901760, %v741_v24 }
  0x73   :  { %2528 = vmatprep.subr.mxu0 %v3084_v0  ;;  %2555 = vmatprep.subr.mxu1 %v3084_v0 }
  0x74   :  { %2529 = vmatpush3.msra.mxu0 %v220_v40  ;;  %2556 = vmatpush3.msra.mxu1 %v3143_v5  ;;  %v3507_v5 = vand.u32 4294901760, %v748_v4  ;;  %v3542_v40 = vsub.f32 %v745_v15, %v3522_v21  ;;  %v3556_v47 = vsub.f32 %v741_v24, %v3532_v29  ;;  %v3634_v15 = vsub.f32 %v737_v36, %v3624_v51 }
  0x75   :  { %2530 = vmatprep.subr.mxu0 %v3084_v0  ;;  %2557 = vmatprep.subr.mxu1 %v3084_v0 }
  0x76   :  { %2531 = vmatpush3.msra.mxu0 %v227_v46  ;;  %2558 = vmatpush3.msra.mxu1 %v3145_v6  ;;  %v747_v6 = vld [vmem:[#allocation4 + $0x70] sm:$0xff]  ;;  %v899_v31 = vand.u32 4294901760, %v3556_v47 }
  0x77   :  { %2532 = vmatprep.subr.mxu0 %v3084_v0  ;;  %2559 = vmatprep.subr.mxu1 %v3084_v0 }
  0x78   :  { %2533 = vmatpush3.msra.mxu0 %v234_v53  ;;  %2560 = vmatpush3.msra.mxu1 %v3147_v10  ;;  %v3510_v10 = vsub.f32 %v748_v4, %v3507_v5  ;;  %v900_v56 = vsub.f32 %v3556_v47, %v899_v31  ;;  %v736_v4 = vld [vmem:[#allocation4 + $0x18] sm:$0xff] }
  0x79   :  { %2534 = vmatprep.subr.mxu0 %v3084_v0  ;;  %2561 = vmatprep.subr.mxu1 %v3084_v0 }
  0x7a   :  { %2535 = vmatpush3.msra.mxu0 %v241_v57  ;;  %2562 = vmatpush3.msra.mxu1 %v3149_v11  ;;  %v3512_v11 = vand.u32 4294901760, %v747_v6 }
  0x7b   :  { %2536 = vmatprep.subr.mxu0 %v3084_v0  ;;  %2563 = vmatprep.subr.mxu1 %v3084_v0 }
  0x7c   :  { %2537 = vmatpush3.msra.mxu0 %v248_v3  ;;  %2564 = vmatpush3.msra.mxu1 %v3151_v12  ;;  %v746_v12 = vld [vmem:[#allocation4 + $0x68] sm:$0xff]  ;;  %v3518_v18 = vsub.f32 %v747_v6, %v3512_v11  ;;  %v914_v6 = vsub.f32 %v3613_v14, %v913_v41 }
  0x7d   :  { %2538 = vmatprep.subr.mxu0 %v3084_v0  ;;  %2565 = vmatprep.subr.mxu1 %v3084_v0  ;;  %v3520_v20 = vand.u32 4294901760, %v746_v12 }
  0x7e   :  { %2539 = vmatpush3.msra.mxu0 %v255_v19  ;;  %2566 = vmatpush3.msra.mxu1 %v3160_v17  ;;  %v850_v17 = vand.u32 4294901760, %v3510_v10  ;;  %v857_v34 = vand.u32 4294901760, %v3518_v18 }
  0x7f   :  { %2540 = vmatprep.subr.mxu0 %v3084_v0  ;;  %2567 = vmatprep.subr.mxu1 %v3084_v0 }
  0x80   :  { %2541 = vmatpush3.msra.mxu0 %v262_v37  ;;  %2568 = vmatpush3.msra.mxu1 %v3176_v25  ;;  %v3525_v25 = vand.u32 4294901760, %v744_v16  ;;  %v851_v30 = vsub.f32 %v3510_v10, %v850_v17  ;;  %v858_v55 = vsub.f32 %v3518_v18, %v857_v34 }
  0x81   :  { %2542 = vmatprep.subr.mxu0 %v3084_v0  ;;  %2569 = vmatprep.subr.mxu1 %v3084_v0 }
  0x82   :  { %2543 = vmatpush3.msra.mxu0 %v269_v44  ;;  %2570 = vmatpush3.msra.mxu1 %v3180_v28  ;;  %v3530_v28 = vand.u32 4294901760, %v742_v23  ;;  %v3546_v43 = vsub.f32 %v744_v16, %v3525_v25  ;;  %v852_v53 = vand.u32 4294901760, %v851_v30  ;;  %v859_v3 = vand.u32 4294901760, %v858_v55  ;;  %v734_v55 = vld [vmem:[#allocation4 + $0x8] sm:$0xff] }
  0x83   :  { %2544 = vmatprep.subr.mxu0 %v3084_v0  ;;  %2571 = vmatprep.subr.mxu1 %v3084_v0  ;;  %v3636_v16 = vand.u32 4294901760, %v736_v4  ;;  %v927_v30 = vand.u32 4294901760, %v3634_v15 }
  0x84   :  { %2545 = vmatpush3.msra.mxu0 %v276_v52  ;;  %2572 = vmatpush3.msra.mxu1 %v3200_v35  ;;  %v3539_v35 = vsub.f32 %v746_v12, %v3520_v20  ;;  %v3552_v46 = vsub.f32 %v742_v23, %v3530_v28  ;;  %v878_v61 = vand.u32 4294901760, %v3546_v43  ;;  %v920_v12 = vand.u32 4294901760, %v3622_v50 }
  0x85   :  { %2546 = vmatprep.subr.mxu0 %v3084_v0  ;;  %2573 = vmatprep.subr.mxu1 %v3084_v0  ;;  %v915_v23 = vand.u32 4294901760, %v914_v6 }
  0x86   :  { %2547 = vmatpush3.msra.mxu0 %v283_v1  ;;  %2574 = vmatpush3.msra.mxu1 %v3215_v45  ;;  %v3549_v45 = vsub.f32 %v743_v22, %v3527_v27  ;;  %v864_v57 = vand.u32 4294901760, %v3539_v35  ;;  %v879_v26 = vsub.f32 %v3546_v43, %v878_v61  ;;  %v735_v22 = vld [vmem:[#allocation4 + $0x10] sm:$0xff]  ;;  %v921_v24 = vsub.f32 %v3622_v50, %v920_v12 }
  0x87   :  { %2548 = vmatprep.subr.mxu0 %v3084_v0  ;;  %2575 = vmatprep.subr.mxu1 %v3084_v0 }
  0x88   :  { %2549 = vmatpush3.msra.mxu0 %v290_v9  ;;  %2550 = vmatprep.mubr.msk.f32.mxu0 %vm3085_vm0, %v3084_v0  ;;  %v865_v8 = vsub.f32 %v3539_v35, %v864_v57  ;;  %v880_v44 = vand.u32 4294901760, %v879_v26  ;;  %v901_v9 = vand.u32 4294901760, %v900_v56  ;;  %v3657_v26 = vand.u32 4294901760, %v734_v55 }
  0x89   :  { %2576 = vmatpush3.msra.mxu1 %v3223_v48  ;;  %2551 = vmatmul.mubr.f32.vlgmr.msra.gmra.mxu0 %v3248_v62  ;;  %v740_v48 = vld [vmem:[#allocation4 + $0x38] sm:$0xff] }
  0x8a   :  { %2577 = vmatprep.subr.mxu1 %v3084_v0  ;;  %2585 = vmatprep.mubr.msk.f32.mxu1 %vm3085_vm0, %v3084_v0  ;;  %v3575_v19 = vand.u32 4294901760, %v740_v48 }
  0x8b   :  { %2578 = vmatpush3.msra.mxu1 %v3243_v59  ;;  %2588 = vmatprep.subr.mxu0 %v3084_v0  ;;  %v871_v59 = vand.u32 4294901760, %v3542_v40 }
  0x8c   :  { %2579 = vmatprep.subr.mxu1 %v3084_v0  ;;  %2620 = vmatprep.mubr.msk.f32.mxu0 %vm3085_vm0, %v3084_v0  ;;  %v3586_v42 = vsub.f32 %v740_v48, %v3575_v19  ;;  %v3646_v48 = vsub.f32 %v736_v4, %v3636_v16 }
  0x8d   :  { %2580 = vmatpush3.msra.mxu1 %v3252_v63  ;;  %2589 = vmatpush3.msra.mxu0 %v3507_v5  ;;  %v892_v63 = vand.u32 4294901760, %v3552_v46 }
  0x8e   :  { %2581 = vmatprep.subr.mxu1 %v3084_v0  ;;  %2590 = vmatprep.subr.mxu0 %v3084_v0  ;;  %v906_v52 = vand.u32 4294901760, %v3586_v42 }
  0x8f   :  { %2582 = vmatpush3.msra.mxu1 %v3267_v13  ;;  %2591 = vmatpush3.msra.mxu0 %v3512_v11  ;;  %v872_v13 = vsub.f32 %v3542_v40, %v871_v59  ;;  %v893_v49 = vsub.f32 %v3552_v46, %v892_v63 }
  0x90   :  { %2583 = vmatprep.subr.mxu1 %v3084_v0  ;;  %2592 = vmatprep.subr.mxu0 %v3084_v0  ;;  %v907_v1 = vsub.f32 %v3586_v42, %v906_v52 }
  0x91   :  { %2584 = vmatpush3.msra.mxu1 %v3279_v32  ;;  %2593 = vmatpush3.msra.mxu0 %v3520_v20  ;;  %v866_v32 = vand.u32 4294901760, %v865_v8  ;;  %v873_v37 = vand.u32 4294901760, %v872_v13  ;;  %v894_v60 = vand.u32 4294901760, %v893_v49  ;;  %v928_v8 = vsub.f32 %v3634_v15, %v927_v30 }
  0x92   :  { %2586 = vmatmul.mubr.f32.vlgmr.msra.gmra.mxu1 %v3248_v62  ;;  %2623 = vmatprep.subr.mxu1 %v3084_v0  ;;  %v885_v62 = vand.u32 4294901760, %v3549_v45  ;;  %v908_v39 = vand.u32 4294901760, %v907_v1  ;;  %v4242_v13 = vand.u32 4294901760, %v3646_v48  ;;  %v3669_v49 = vsub.f32 %v734_v55, %v3657_v26 }
  0x93   :  { %2655 = vmatprep.mubr.msk.f32.mxu1 %vm3085_vm0, %v3084_v0  ;;  %2594 = vmatprep.subr.mxu0 %v3084_v0 }
  0x94   :  { %2595 = vmatpush3.msra.mxu0 %v3522_v21  ;;  %2624 = vmatpush3.msra.mxu1 %v852_v53  ;;  %v886_v38 = vsub.f32 %v3549_v45, %v885_v62  ;;  %v3650_v53 = vand.u32 4294901760, %v735_v22 }
  0x95   :  { %2596 = vmatprep.subr.mxu0 %v3084_v0  ;;  %2625 = vmatprep.subr.mxu1 %v3084_v0 }
  0x96   :  { %2597 = vmatpush3.msra.mxu0 %v3525_v25  ;;  %2626 = vmatpush3.msra.mxu1 %v859_v3  ;;  %v887_v54 = vand.u32 4294901760, %v886_v38  ;;  %v922_v3 = vand.u32 4294901760, %v921_v24  ;;  %v929_v38 = vand.u32 4294901760, %v928_v8 }
  0x97   :  { %2598 = vmatprep.subr.mxu0 %v3084_v0  ;;  %2627 = vmatprep.subr.mxu1 %v3084_v0 }
  0x98   :  { %2599 = vmatpush3.msra.mxu0 %v3527_v27  ;;  %2628 = vmatpush3.msra.mxu1 %v866_v32  ;;  %v3662_v32 = vsub.f32 %v735_v22, %v3650_v53 }
  0x99   :  { %2600 = vmatprep.subr.mxu0 %v3084_v0  ;;  %2629 = vmatprep.subr.mxu1 %v3084_v0 }
  0x9a   :  { %2601 = vmatpush3.msra.mxu0 %v3530_v28  ;;  %2630 = vmatpush3.msra.mxu1 %v873_v37  ;;  %v733_v37 = vld [vmem:[#allocation4] sm:$0xff]  ;;  %v4241_v56 = vand.u32 4294901760, %v3662_v32 }
  0x9b   :  { %2602 = vmatprep.subr.mxu0 %v3084_v0  ;;  %2631 = vmatprep.subr.mxu1 %v3084_v0 }
  0x9c   :  { %2603 = vmatpush3.msra.mxu0 %v3532_v29  ;;  %2632 = vmatpush3.msra.mxu1 %v880_v44  ;;  %v935_v44 = vsub.f32 %v3646_v48, %v4242_v13  ;;  %v942_v7 = vsub.f32 %v3662_v32, %v4241_v56 }
  0x9d   :  { %2604 = vmatprep.subr.mxu0 %v3084_v0  ;;  %2633 = vmatprep.subr.mxu1 %v3084_v0 }
  0x9e   :  { %2605 = vmatpush3.msra.mxu0 %v3575_v19  ;;  %2634 = vmatpush3.msra.mxu1 %v887_v54  ;;  %v3671_v54 = vand.u32 4294901760, %v733_v37  ;;  %v936_v58 = vand.u32 4294901760, %v935_v44 }
  0x9f   :  { %2606 = vmatprep.subr.mxu0 %v3084_v0  ;;  %2635 = vmatprep.subr.mxu1 %v3084_v0 }
  0xa0   :  { %2607 = vmatpush3.msra.mxu0 %v3607_v2  ;;  %2636 = vmatpush3.msra.mxu1 %v894_v60  ;;  %v4240_v60 = vand.u32 4294901760, %v3669_v49  ;;  %v3679_v1 = vsub.f32 %v733_v37, %v3671_v54 }
  0xa1   :  { %2608 = vmatprep.subr.mxu0 %v3084_v0  ;;  %2637 = vmatprep.subr.mxu1 %v3084_v0 }
  0xa2   :  { %2609 = vmatpush3.msra.mxu0 %v3615_v33  ;;  %2638 = vmatpush3.msra.mxu1 %v901_v9  ;;  %v949_v9 = vsub.f32 %v3669_v49, %v4240_v60  ;;  %v4239_v36 = vand.u32 4294901760, %v3679_v1 }
  0xa3   :  { %2610 = vmatprep.subr.mxu0 %v3084_v0  ;;  %2639 = vmatprep.subr.mxu1 %v3084_v0 }
  0xa4   :  { %2611 = vmatpush3.msra.mxu0 %v3624_v51  ;;  %2640 = vmatpush3.msra.mxu1 %v908_v39  ;;  %v943_v39 = vand.u32 4294901760, %v942_v7  ;;  %v950_v4 = vand.u32 4294901760, %v949_v9  ;;  %v956_v6 = vsub.f32 %v3679_v1, %v4239_v36 }
  0xa5   :  { %2612 = vmatprep.subr.mxu0 %v3084_v0  ;;  %2641 = vmatprep.subr.mxu1 %v3084_v0 }
  0xa6   :  { %2613 = vmatpush3.msra.mxu0 %v3636_v16  ;;  %2642 = vmatpush3.msra.mxu1 %v915_v23  ;;  %v957_v22 = vand.u32 4294901760, %v956_v6 }
  0xa7   :  { %2614 = vmatprep.subr.mxu0 %v3084_v0  ;;  %2643 = vmatprep.subr.mxu1 %v3084_v0 }
  0xa8   :  { %2615 = vmatpush3.msra.mxu0 %v3650_v53  ;;  %2644 = vmatpush3.msra.mxu1 %v922_v3 }
  0xa9   :  { %2616 = vmatprep.subr.mxu0 %v3084_v0  ;;  %2645 = vmatprep.subr.mxu1 %v3084_v0 }
  0xaa   :  { %2617 = vmatpush3.msra.mxu0 %v3657_v26  ;;  %2646 = vmatpush3.msra.mxu1 %v929_v38 }
  0xab   :  { %2618 = vmatprep.subr.mxu0 %v3084_v0  ;;  %2647 = vmatprep.subr.mxu1 %v3084_v0 }
  0xac   :  { %2619 = vmatpush3.msra.mxu0 %v3671_v54  ;;  %2648 = vmatpush3.msra.mxu1 %v936_v58  ;;  %v2069_v58 = vld [vmem:[%s4233_s2] ss:$0 sm:$0xff] }
  0xad   :  { %2658 = vmatprep.subr.mxu0 %v3084_v0  ;;  %2649 = vmatprep.subr.mxu1 %v3084_v0 }
  0xae   :  { %2650 = vmatpush3.msra.mxu1 %v943_v39 }
  0xaf   :  { %2651 = vmatprep.subr.mxu1 %v3084_v0 }
  0xb0   :  { %2652 = vmatpush3.msra.mxu1 %v950_v4 }
  0xb1   :  { %2653 = vmatprep.subr.mxu1 %v3084_v0 }
  0xb2   :  { %2654 = vmatpush3.msra.mxu1 %v957_v22 }
  0xb3   :  { %2693 = vmatprep.subr.mxu1 %v3084_v0 }
 0x107   :  { %v178_v23 = vpop.f32.mrf.mxu0 }
 0x108   :  { %v179_v7 = vadd.f32 %v2069_v58, %v178_v23 }
 0x109   :  { %v2412_v24 = vpop.f32.mrf.mxu0 }
 0x10e   :  { %v329_v55 = vpop.f32.mrf.mxu1 }
 0x10f   :  { %v330_v39 = vadd.f32 %v329_v55, %v179_v7 }
 0x110   :  { %v2447_v3 = vpop.f32.mrf.mxu1 }
 0x127   :  { %v433_v8 = vpop.f32.mrf.mxu0 }
 0x128   :  { %v434_v6 = vadd.f32 %v433_v8, %v330_v39 }
 0x129   :  { %v2482_v37 = vpop.f32.mrf.mxu0 }
 0x130   :  { %v522_v38 = vpop.f32.mrf.mxu1 }
 0x131   :  { %v523_v22 = vadd.f32 %v522_v38, %v434_v6  ;;  %v1405_v38 = vld [vmem:[#allocation6 + $0x38] sm:$0xff] }
 0x132   :  { %v2517_v44 = vpop.f32.mrf.mxu1  ;;  %v3958_v7 = vand.u32 4294901760, %v1405_v38 }
 0x149   :  { %v641_v9 = vpop.f32.mrf.mxu0 }
 0x14a   :  { %v642_v36 = vadd.f32 %v641_v9, %v523_v22  ;;  %v1404_v9 = vld [vmem:[#allocation6 + $0x30] sm:$0xff]  ;;  %v1403_v22 = vld [vmem:[#allocation6 + $0x28] sm:$0xff] }
 0x14b   :  { %v2552_v4 = vpop.f32.mrf.mxu0  ;;  %v3966_v6 = vand.u32 4294901760, %v1404_v9 }
 0x14c   :  { %v3964_v4 = vsub.f32 %v1405_v38, %v3958_v7 }
 0x152   :  { %v728_v60 = vpop.f32.mrf.mxu1 }
 0x153   :  { %v729_v56 = vadd.f32 %v728_v60, %v642_v36 }
 0x154   :  { %v2587_v24 = vpop.f32.mrf.mxu1 }
 0x155   :  { %v732_v13 = vmax.f32 %v729_v56, 0.0 }
 0x157   :  { %v3702_v3 = vand.u32 4294901760, %v732_v13 }
 0x159   :  { %v3705_v37 = vsub.f32 %v732_v13, %v3702_v3  ;;  %2656 = vmatmul.mubr.f32.vlgmr.msra.gmra.mxu1 %v3702_v3 }
 0x15a   :  { %2694 = vmatpush3.msra.mxu1 %v3507_v5  ;;  %2725 = vmatprep.mubr.msk.f32.mxu1 %vm3085_vm0, %v3084_v0 }
 0x15b   :  { %v839_v23 = vand.u32 4294901760, %v3705_v37  ;;  %2695 = vmatprep.subr.mxu1 %v3084_v0 }
 0x15c   :  { %2696 = vmatpush3.msra.mxu1 %v3512_v11 }
 0x15d   :  { %v840_v56 = vsub.f32 %v3705_v37, %v839_v23  ;;  %2697 = vmatprep.subr.mxu1 %v3084_v0 }
 0x15e   :  { %2698 = vmatpush3.msra.mxu1 %v3520_v20 }
 0x15f   :  { %2699 = vmatprep.subr.mxu1 %v3084_v0  ;;  %v841_v13 = vand.u32 4294901760, %v840_v56  ;;  %v1402_v56 = vld [vmem:[#allocation6 + $0x20] sm:$0xff] }
 0x160   :  { %2700 = vmatpush3.msra.mxu1 %v3522_v21 }
 0x161   :  { %2701 = vmatprep.subr.mxu1 %v3084_v0  ;;  %2621 = vmatmul.mubr.f32.vlgmr.msra.gmra.mxu0 %v841_v13 }
 0x162   :  { %2659 = vmatpush3.msra.mxu0 %v3510_v10  ;;  %2702 = vmatpush3.msra.mxu1 %v3525_v25  ;;  %v4248_v10 = vand.u32 4294901760, %v3662_v32 }
 0x163   :  { %2660 = vmatprep.subr.mxu0 %v3084_v0  ;;  %2703 = vmatprep.subr.mxu1 %v3084_v0 }
 0x164   :  { %2661 = vmatpush3.msra.mxu0 %v3518_v18  ;;  %2704 = vmatpush3.msra.mxu1 %v3527_v27  ;;  %v1413_v18 = vld [vmem:[#allocation6 + $0x78] sm:$0xff] }
 0x165   :  { %2662 = vmatprep.subr.mxu0 %v3084_v0  ;;  %2705 = vmatprep.subr.mxu1 %v3084_v0 }
 0x166   :  { %2663 = vmatpush3.msra.mxu0 %v3539_v35  ;;  %2706 = vmatpush3.msra.mxu1 %v3530_v28 }
 0x167   :  { %2664 = vmatprep.subr.mxu0 %v3084_v0  ;;  %2707 = vmatprep.subr.mxu1 %v3084_v0 }
 0x168   :  { %2665 = vmatpush3.msra.mxu0 %v3542_v40  ;;  %2708 = vmatpush3.msra.mxu1 %v3532_v29 }
 0x169   :  { %2666 = vmatprep.subr.mxu0 %v3084_v0  ;;  %2709 = vmatprep.subr.mxu1 %v3084_v0 }
 0x16a   :  { %2667 = vmatpush3.msra.mxu0 %v3546_v43  ;;  %2710 = vmatpush3.msra.mxu1 %v3575_v19 }
 0x16b   :  { %2668 = vmatprep.subr.mxu0 %v3084_v0  ;;  %2711 = vmatprep.subr.mxu1 %v3084_v0 }
 0x16c   :  { %2669 = vmatpush3.msra.mxu0 %v3549_v45  ;;  %2712 = vmatpush3.msra.mxu1 %v3607_v2  ;;  %v1408_v45 = vld [vmem:[#allocation6 + $0x50] sm:$0xff] }
 0x16d   :  { %2670 = vmatprep.subr.mxu0 %v3084_v0  ;;  %2713 = vmatprep.subr.mxu1 %v3084_v0 }
 0x16e   :  { %2671 = vmatpush3.msra.mxu0 %v3552_v46  ;;  %2714 = vmatpush3.msra.mxu1 %v3615_v33  ;;  %v1407_v46 = vld [vmem:[#allocation6 + $0x48] sm:$0xff] }
 0x16f   :  { %2672 = vmatprep.subr.mxu0 %v3084_v0  ;;  %2715 = vmatprep.subr.mxu1 %v3084_v0 }
 0x170   :  { %2673 = vmatpush3.msra.mxu0 %v3556_v47  ;;  %2716 = vmatpush3.msra.mxu1 %v3624_v51  ;;  %v1406_v47 = vld [vmem:[#allocation6 + $0x40] sm:$0xff] }
 0x171   :  { %2674 = vmatprep.subr.mxu0 %v3084_v0  ;;  %2717 = vmatprep.subr.mxu1 %v3084_v0 }
 0x172   :  { %2675 = vmatpush3.msra.mxu0 %v3586_v42  ;;  %2718 = vmatpush3.msra.mxu1 %v3636_v16  ;;  %v3903_v42 = vand.u32 4294901760, %v1406_v47 }
 0x173   :  { %2676 = vmatprep.subr.mxu0 %v3084_v0  ;;  %2719 = vmatprep.subr.mxu1 %v3084_v0 }
 0x174   :  { %2677 = vmatpush3.msra.mxu0 %v3613_v14  ;;  %2720 = vmatpush3.msra.mxu1 %v3650_v53 }
 0x175   :  { %2678 = vmatprep.subr.mxu0 %v3084_v0  ;;  %2721 = vmatprep.subr.mxu1 %v3084_v0 }
 0x176   :  { %2679 = vmatpush3.msra.mxu0 %v3622_v50  ;;  %2722 = vmatpush3.msra.mxu1 %v3657_v26 }
 0x177   :  { %2680 = vmatprep.subr.mxu0 %v3084_v0  ;;  %2723 = vmatprep.subr.mxu1 %v3084_v0 }
 0x178   :  { %2681 = vmatpush3.msra.mxu0 %v3634_v15  ;;  %2724 = vmatpush3.msra.mxu1 %v3671_v54 }
 0x179   :  { %2682 = vmatprep.subr.mxu0 %v3084_v0  ;;  %2726 = vmatmul.mubr.f32.vlgmr.msra.gmra.mxu1 %v839_v23  ;;  %v3975_v23 = vand.u32 4294901760, %v1403_v22 }
 0x17a   :  { %2763 = vmatprep.subr.mxu1 %v3084_v0  ;;  %2683 = vmatpush3.msra.mxu0 %v3646_v48 }
 0x17b   :  { %2764 = vmatpush3.msra.mxu1 %v3507_v5  ;;  %2684 = vmatprep.subr.mxu0 %v3084_v0  ;;  %v4247_v5 = vand.u32 4294901760, %v3646_v48 }
 0x17c   :  { %2765 = vmatprep.subr.mxu1 %v3084_v0  ;;  %2685 = vmatpush3.msra.mxu0 %v3662_v32 }
 0x17d   :  { %2766 = vmatpush3.msra.mxu1 %v3512_v11  ;;  %2686 = vmatprep.subr.mxu0 %v3084_v0  ;;  %v4249_v11 = vand.u32 4294901760, %v3669_v49 }
 0x17e   :  { %2767 = vmatprep.subr.mxu1 %v3084_v0  ;;  %2687 = vmatpush3.msra.mxu0 %v3669_v49 }
 0x17f   :  { %2768 = vmatpush3.msra.mxu1 %v3520_v20  ;;  %2688 = vmatprep.subr.mxu0 %v3084_v0  ;;  %v3869_v20 = vand.u32 4294901760, %v1413_v18 }
 0x180   :  { %2769 = vmatprep.subr.mxu1 %v3084_v0  ;;  %2689 = vmatpush3.msra.mxu0 %v3679_v1 }
 0x181   :  { %2690 = vmatprep.mubr.msk.f32.mxu0 %vm3085_vm0, %v3084_v0  ;;  %2770 = vmatpush3.msra.mxu1 %v3522_v21  ;;  %v1412_v21 = vld [vmem:[#allocation6 + $0x70] sm:$0xff] }
 0x182   :  { %2691 = vmatmul.mubr.f32.vlgmr.msra.gmra.mxu0 %v3705_v37  ;;  %2728 = vmatprep.subr.mxu0 %v3084_v0  ;;  %v3973_v37 = vsub.f32 %v1404_v9, %v3966_v6 }
 0x183   :  { %2771 = vmatprep.subr.mxu1 %v3084_v0  ;;  %2729 = vmatpush3.msra.mxu0 %v850_v17  ;;  %v4250_v17 = vand.u32 4294901760, %v3679_v1 }
 0x184   :  { %2772 = vmatpush3.msra.mxu1 %v3525_v25  ;;  %2730 = vmatprep.subr.mxu0 %v3084_v0  ;;  %v3872_v25 = vsub.f32 %v1413_v18, %v3869_v20 }
 0x185   :  { %2773 = vmatprep.subr.mxu1 %v3084_v0  ;;  %2731 = vmatpush3.msra.mxu0 %v857_v34  ;;  %v1409_v34 = vld [vmem:[#allocation6 + $0x58] sm:$0xff] }
 0x186   :  { %2774 = vmatpush3.msra.mxu1 %v3527_v27  ;;  %2732 = vmatprep.subr.mxu0 %v3084_v0  ;;  %v3874_v27 = vand.u32 4294901760, %v1412_v21  ;;  %v3881_v43 = vand.u32 4294901760, %v1409_v34 }
 0x187   :  { %2775 = vmatprep.subr.mxu1 %v3084_v0  ;;  %2733 = vmatpush3.msra.mxu0 %v864_v57  ;;  %v1515_v57 = vand.u32 4294901760, %v3872_v25 }
 0x188   :  { %2776 = vmatpush3.msra.mxu1 %v3530_v28  ;;  %2734 = vmatprep.subr.mxu0 %v3084_v0  ;;  %v1411_v28 = vld [vmem:[#allocation6 + $0x68] sm:$0xff] }
 0x189   :  { %2777 = vmatprep.subr.mxu1 %v3084_v0  ;;  %2735 = vmatpush3.msra.mxu0 %v871_v59  ;;  %v3877_v35 = vand.u32 4294901760, %v1411_v28  ;;  %v3886_v59 = vsub.f32 %v1412_v21, %v3874_v27 }
 0x18a   :  { %2778 = vmatpush3.msra.mxu1 %v3532_v29  ;;  %2736 = vmatprep.subr.mxu0 %v3084_v0  ;;  %v1410_v29 = vld [vmem:[#allocation6 + $0x60] sm:$0xff] }
 0x18b   :  { %2779 = vmatprep.subr.mxu1 %v3084_v0  ;;  %2737 = vmatpush3.msra.mxu0 %v878_v61  ;;  %v3879_v40 = vand.u32 4294901760, %v1410_v29  ;;  %v3889_v61 = vand.u32 4294901760, %v1408_v45 }
 0x18c   :  { %2780 = vmatpush3.msra.mxu1 %v3575_v19  ;;  %2738 = vmatprep.subr.mxu0 %v3084_v0 }
 0x18d   :  { %2781 = vmatprep.subr.mxu1 %v3084_v0  ;;  %2739 = vmatpush3.msra.mxu0 %v885_v62  ;;  %v3891_v62 = vand.u32 4294901760, %v1407_v46  ;;  %v3897_v19 = vsub.f32 %v1410_v29, %v3879_v40  ;;  %v3910_v14 = vsub.f32 %v1408_v45, %v3889_v61  ;;  %v1400_v45 = vld [vmem:[#allocation6 + $0x10] sm:$0xff] }
 0x18e   :  { %2782 = vmatpush3.msra.mxu1 %v3607_v2  ;;  %2740 = vmatprep.subr.mxu0 %v3084_v0  ;;  %v1522_v2 = vand.u32 4294901760, %v3886_v59 }
 0x18f   :  { %2783 = vmatprep.subr.mxu1 %v3084_v0  ;;  %2741 = vmatpush3.msra.mxu0 %v892_v63  ;;  %v3894_v63 = vsub.f32 %v1411_v28, %v3877_v35  ;;  %v1536_v50 = vand.u32 4294901760, %v3897_v19 }
 0x190   :  { %2784 = vmatpush3.msra.mxu1 %v3615_v33  ;;  %2742 = vmatprep.subr.mxu0 %v3084_v0  ;;  %v3914_v33 = vsub.f32 %v1407_v46, %v3891_v62  ;;  %v1523_v15 = vsub.f32 %v3886_v59, %v1522_v2 }
 0x191   :  { %2785 = vmatprep.subr.mxu1 %v3084_v0  ;;  %2743 = vmatpush3.msra.mxu0 %v899_v31  ;;  %v3900_v31 = vsub.f32 %v1409_v34, %v3881_v43 }
 0x192   :  { %2786 = vmatpush3.msra.mxu1 %v3624_v51  ;;  %2744 = vmatprep.subr.mxu0 %v3084_v0  ;;  %v1557_v49 = vand.u32 4294901760, %v3914_v33 }
 0x193   :  { %2787 = vmatprep.subr.mxu1 %v3084_v0  ;;  %2745 = vmatpush3.msra.mxu0 %v906_v52  ;;  %v1516_v52 = vsub.f32 %v3872_v25, %v1515_v57  ;;  %v1543_v51 = vand.u32 4294901760, %v3900_v31 }
 0x194   :  { %2788 = vmatpush3.msra.mxu1 %v3636_v16  ;;  %2746 = vmatprep.subr.mxu0 %v3084_v0  ;;  %v1550_v16 = vand.u32 4294901760, %v3910_v14  ;;  %v1558_v8 = vsub.f32 %v3914_v33, %v1557_v49 }
 0x195   :  { %2789 = vmatprep.subr.mxu1 %v3084_v0  ;;  %2747 = vmatpush3.msra.mxu0 %v913_v41  ;;  %v1529_v41 = vand.u32 4294901760, %v3894_v63  ;;  %v1544_v32 = vsub.f32 %v3900_v31, %v1543_v51 }
 0x196   :  { %2790 = vmatpush3.msra.mxu1 %v3650_v53  ;;  %2748 = vmatprep.subr.mxu0 %v3084_v0  ;;  %v1537_v53 = vsub.f32 %v3897_v19, %v1536_v50  ;;  %v1551_v1 = vsub.f32 %v3910_v14, %v1550_v16  ;;  %v1559_v39 = vand.u32 4294901760, %v1558_v8 }
 0x197   :  { %2791 = vmatprep.subr.mxu1 %v3084_v0  ;;  %2749 = vmatpush3.msra.mxu0 %v920_v12  ;;  %v1517_v12 = vand.u32 4294901760, %v1516_v52  ;;  %v1530_v48 = vsub.f32 %v3894_v63, %v1529_v41  ;;  %v1545_v55 = vand.u32 4294901760, %v1544_v32 }
 0x198   :  { %2792 = vmatpush3.msra.mxu1 %v3657_v26  ;;  %2750 = vmatprep.subr.mxu0 %v3084_v0  ;;  %v1524_v26 = vand.u32 4294901760, %v1523_v15  ;;  %v1538_v60 = vand.u32 4294901760, %v1537_v53  ;;  %v1552_v44 = vand.u32 4294901760, %v1551_v1  ;;  %v1398_v1 = vld [vmem:[#allocation6] sm:$0xff] }
 0x199   :  { %2793 = vmatprep.subr.mxu1 %v3084_v0  ;;  %2751 = vmatpush3.msra.mxu0 %v927_v30  ;;  %v3926_v30 = vsub.f32 %v1406_v47, %v3903_v42 }
 0x19a   :  { %2794 = vmatpush3.msra.mxu1 %v3671_v54  ;;  %2795 = vmatprep.mubr.msk.f32.mxu1 %vm3085_vm0, %v3084_v0  ;;  %v1531_v54 = vand.u32 4294901760, %v1530_v48  ;;  %v1399_v48 = vld [vmem:[#allocation6 + $0x8] sm:$0xff] }
 0x19b   :  { %2752 = vmatprep.subr.mxu0 %v3084_v0  ;;  %2796 = vmatmul.mubr.f32.vlgmr.msra.gmra.mxu1 %v3702_v3  ;;  %v1564_v36 = vand.u32 4294901760, %v3926_v30 }
 0x19c   :  { %2753 = vmatpush3.msra.mxu0 %v4247_v5  ;;  %2760 = vmatprep.mubr.msk.f32.mxu0 %vm3085_vm0, %v3084_v0  ;;  %v1578_v5 = vand.u32 4294901760, %v3973_v37 }
 0x19d   :  { %2754 = vmatprep.subr.mxu0 %v3084_v0  ;;  %2833 = vmatprep.subr.mxu1 %v3084_v0  ;;  %v1565_v58 = vsub.f32 %v3926_v30, %v1564_v36 }
 0x19e   :  { %2755 = vmatpush3.msra.mxu0 %v4248_v10  ;;  %2865 = vmatprep.mubr.msk.f32.mxu1 %vm3085_vm0, %v3084_v0  ;;  %v3985_v10 = vsub.f32 %v1403_v22, %v3975_v23  ;;  %v1579_v21 = vsub.f32 %v3973_v37, %v1578_v5 }
 0x19f   :  { %2756 = vmatprep.subr.mxu0 %v3084_v0  ;;  %2834 = vmatpush3.msra.mxu1 %v1517_v12  ;;  %v1566_v24 = vand.u32 4294901760, %v1565_v58  ;;  %v4008_v12 = vand.u32 4294901760, %v1400_v45 }
 0x1a0   :  { %2757 = vmatpush3.msra.mxu0 %v4249_v11  ;;  %2835 = vmatprep.subr.mxu1 %v3084_v0  ;;  %v3987_v11 = vand.u32 4294901760, %v1402_v56  ;;  %v1585_v28 = vand.u32 4294901760, %v3985_v10  ;;  %v1580_v46 = vand.u32 4294901760, %v1579_v21 }
 0x1a1   :  { %2758 = vmatprep.subr.mxu0 %v3084_v0  ;;  %2836 = vmatpush3.msra.mxu1 %v1524_v26  ;;  %v4019_v32 = vsub.f32 %v1400_v45, %v4008_v12 }
 0x1a2   :  { %2759 = vmatpush3.msra.mxu0 %v4250_v17  ;;  %2837 = vmatprep.subr.mxu1 %v3084_v0  ;;  %v1401_v17 = vld [vmem:[#allocation6 + $0x18] sm:$0xff]  ;;  %v3997_v29 = vsub.f32 %v1402_v56, %v3987_v11  ;;  %v1586_v47 = vsub.f32 %v3985_v10, %v1585_v28 }
 0x1a3   :  { %2761 = vmatmul.mubr.f32.vlgmr.msra.gmra.mxu0 %v3702_v3  ;;  %2798 = vmatprep.subr.mxu0 %v3084_v0  ;;  %v1571_v3 = vand.u32 4294901760, %v3964_v4  ;;  %v4001_v34 = vand.u32 4294901760, %v1401_v17  ;;  %v4245_v8 = vand.u32 4294901760, %v4019_v32 }
 0x1a4   :  { %2830 = vmatprep.mubr.msk.f32.mxu0 %vm3085_vm0, %v3084_v0  ;;  %2799 = vmatpush3.msra.mxu0 %v3869_v20  ;;  %v1592_v52 = vand.u32 4294901760, %v3997_v29  ;;  %v1587_v53 = vand.u32 4294901760, %v1586_v47 }
 0x1a5   :  { %2800 = vmatprep.subr.mxu0 %v3084_v0  ;;  %2838 = vmatpush3.msra.mxu1 %v1531_v54  ;;  %v1572_v13 = vsub.f32 %v3964_v4, %v1571_v3  ;;  %v4012_v15 = vsub.f32 %v1401_v17, %v4001_v34  ;;  %v4021_v54 = vand.u32 4294901760, %v1399_v48  ;;  %v1607_v9 = vsub.f32 %v4019_v32, %v4245_v8 }
 0x1a6   :  { %2801 = vmatpush3.msra.mxu0 %v3874_v27  ;;  %2839 = vmatprep.subr.mxu1 %v3084_v0  ;;  %v1593_v26 = vsub.f32 %v3997_v29, %v1592_v52 }
 0x1a7   :  { %2802 = vmatprep.subr.mxu0 %v3084_v0  ;;  %2840 = vmatpush3.msra.mxu1 %v1538_v60  ;;  %v1573_v18 = vand.u32 4294901760, %v1572_v13  ;;  %v4246_v60 = vand.u32 4294901760, %v4012_v15  ;;  %v4029_v38 = vsub.f32 %v1399_v48, %v4021_v54  ;;  %v1608_v56 = vand.u32 4294901760, %v1607_v9  ;;  %v2070_v9 = vld [vmem:[%s4235_s4] ss:$0 sm:$0xff] }
 0x1a8   :  { %2803 = vmatpush3.msra.mxu0 %v3877_v35  ;;  %2841 = vmatprep.subr.mxu1 %v3084_v0 }
 0x1a9   :  { %2804 = vmatprep.subr.mxu0 %v3084_v0  ;;  %2842 = vmatpush3.msra.mxu1 %v1545_v55  ;;  %v1594_v55 = vand.u32 4294901760, %v1593_v26  ;;  %v1600_v58 = vsub.f32 %v4012_v15, %v4246_v60 }
 0x1aa   :  { %2805 = vmatpush3.msra.mxu0 %v3879_v40  ;;  %2843 = vmatprep.subr.mxu1 %v3084_v0 }
 0x1ab   :  { %2806 = vmatprep.subr.mxu0 %v3084_v0  ;;  %2844 = vmatpush3.msra.mxu1 %v1552_v44  ;;  %v4031_v44 = vand.u32 4294901760, %v1398_v1 }
 0x1ac   :  { %2807 = vmatpush3.msra.mxu0 %v3881_v43  ;;  %2845 = vmatprep.subr.mxu1 %v3084_v0 }
 0x1ad   :  { %2808 = vmatprep.subr.mxu0 %v3084_v0  ;;  %2846 = vmatpush3.msra.mxu1 %v1559_v39  ;;  %v4244_v39 = vand.u32 4294901760, %v4029_v38  ;;  %v4044_v22 = vsub.f32 %v1398_v1, %v4031_v44 }
 0x1ae   :  { %2809 = vmatpush3.msra.mxu0 %v3889_v61  ;;  %2847 = vmatprep.subr.mxu1 %v3084_v0 }
 0x1af   :  { %2810 = vmatprep.subr.mxu0 %v3084_v0  ;;  %2848 = vmatpush3.msra.mxu1 %v1566_v24  ;;  %v1601_v24 = vand.u32 4294901760, %v1600_v58  ;;  %v1614_v13 = vsub.f32 %v4029_v38, %v4244_v39  ;;  %v4243_v17 = vand.u32 4294901760, %v4044_v22 }
 0x1b0   :  { %2811 = vmatpush3.msra.mxu0 %v3891_v62  ;;  %2849 = vmatprep.subr.mxu1 %v3084_v0 }
 0x1b1   :  { %2812 = vmatprep.subr.mxu0 %v3084_v0  ;;  %2850 = vmatpush3.msra.mxu1 %v1573_v18  ;;  %v1615_v18 = vand.u32 4294901760, %v1614_v13  ;;  %v1621_v21 = vsub.f32 %v4044_v22, %v4243_v17 }
 0x1b2   :  { %2813 = vmatpush3.msra.mxu0 %v3903_v42  ;;  %2851 = vmatprep.subr.mxu1 %v3084_v0 }
 0x1b3   :  { %2814 = vmatprep.subr.mxu0 %v3084_v0  ;;  %2852 = vmatpush3.msra.mxu1 %v1580_v46  ;;  %v1622_v45 = vand.u32 4294901760, %v1621_v21 }
 0x1b4   :  { %2815 = vmatpush3.msra.mxu0 %v3958_v7  ;;  %2853 = vmatprep.subr.mxu1 %v3084_v0 }
 0x1b5   :  { %2816 = vmatprep.subr.mxu0 %v3084_v0  ;;  %2854 = vmatpush3.msra.mxu1 %v1587_v53 }
 0x1b6   :  { %2817 = vmatpush3.msra.mxu0 %v3966_v6  ;;  %2855 = vmatprep.subr.mxu1 %v3084_v0 }
 0x1b7   :  { %2818 = vmatprep.subr.mxu0 %v3084_v0  ;;  %2856 = vmatpush3.msra.mxu1 %v1594_v55 }
 0x1b8   :  { %2819 = vmatpush3.msra.mxu0 %v3975_v23  ;;  %2857 = vmatprep.subr.mxu1 %v3084_v0 }
 0x1b9   :  { %2820 = vmatprep.subr.mxu0 %v3084_v0  ;;  %2858 = vmatpush3.msra.mxu1 %v1601_v24 }
 0x1ba   :  { %2821 = vmatpush3.msra.mxu0 %v3987_v11  ;;  %2859 = vmatprep.subr.mxu1 %v3084_v0 }
 0x1bb   :  { %2822 = vmatprep.subr.mxu0 %v3084_v0  ;;  %2860 = vmatpush3.msra.mxu1 %v1608_v56 }
 0x1bc   :  { %2823 = vmatpush3.msra.mxu0 %v4001_v34  ;;  %2861 = vmatprep.subr.mxu1 %v3084_v0 }
 0x1bd   :  { %2824 = vmatprep.subr.mxu0 %v3084_v0  ;;  %2862 = vmatpush3.msra.mxu1 %v1615_v18 }
 0x1be   :  { %2825 = vmatpush3.msra.mxu0 %v4008_v12  ;;  %2863 = vmatprep.subr.mxu1 %v3084_v0 }
 0x1bf   :  { %2826 = vmatprep.subr.mxu0 %v3084_v0  ;;  %2864 = vmatpush3.msra.mxu1 %v1622_v45 }
 0x1c0   :  { %2827 = vmatpush3.msra.mxu0 %v4021_v54  ;;  %2903 = vmatprep.subr.mxu1 %v3084_v0 }
 0x1c1   :  { %2828 = vmatprep.subr.mxu0 %v3084_v0 }
 0x1c2   :  { %2829 = vmatpush3.msra.mxu0 %v4031_v44 }
 0x1c3   :  { %2868 = vmatprep.subr.mxu0 %v3084_v0 }
 0x219   :  { %v994_v46 = vpop.f32.mrf.mxu1 }
 0x21b   :  { %v2657_v47 = vpop.f32.mrf.mxu1 }
 0x221   :  { %v843_v48 = vpop.f32.mrf.mxu0 }
 0x222   :  { %v844_v24 = vadd.f32 %v2070_v9, %v843_v48 }
 0x223   :  { %v2622_v53 = vpop.f32.mrf.mxu0 }
 0x224   :  { %v995_v13 = vadd.f32 %v994_v46, %v844_v24 }
 0x239   :  { %v1187_v26 = vpop.f32.mrf.mxu1 }
 0x23b   :  { %v2727_v1 = vpop.f32.mrf.mxu1 }
 0x242   :  { %v1098_v55 = vpop.f32.mrf.mxu0 }
 0x243   :  { %v1099_v21 = vadd.f32 %v1098_v55, %v995_v13 }
 0x244   :  { %v2692_v58 = vpop.f32.mrf.mxu0 }
 0x245   :  { %v1188_v45 = vadd.f32 %v1187_v26, %v1099_v21 }
 0x25b   :  { %v1393_v56 = vpop.f32.mrf.mxu1 }
 0x25d   :  { %v2797_v18 = vpop.f32.mrf.mxu1 }
 0x263   :  { %v1306_v17 = vpop.f32.mrf.mxu0 }
 0x264   :  { %v1307_v39 = vadd.f32 %v1306_v17, %v1188_v45 }
 0x265   :  { %v2762_v8 = vpop.f32.mrf.mxu0 }
 0x266   :  { %v1394_v47 = vadd.f32 %v1393_v56, %v1307_v39 }
 0x268   :  { %v1397_v60 = vmax.f32 %v1394_v47, 0.0 }
 0x26a   :  { %v4064_v53 = vand.u32 4294901760, %v1397_v60 }
 0x26c   :  { %v4067_v1 = vsub.f32 %v1397_v60, %v4064_v53  ;;  %2866 = vmatmul.mubr.f32.vlgmr.msra.gmra.mxu1 %v4064_v53 }
 0x26d   :  { %2904 = vmatpush3.msra.mxu1 %v3869_v20  ;;  %2935 = vmatprep.mubr.msk.f32.mxu1 %vm3085_vm0, %v3084_v0 }
 0x26e   :  { %v1504_v46 = vand.u32 4294901760, %v4067_v1  ;;  %2905 = vmatprep.subr.mxu1 %v3084_v0 }
 0x26f   :  { %2906 = vmatpush3.msra.mxu1 %v3874_v27 }
 0x270   :  { %2907 = vmatprep.subr.mxu1 %v3084_v0  ;;  %v1505_v8 = vsub.f32 %v4067_v1, %v1504_v46 }
 0x271   :  { %2908 = vmatpush3.msra.mxu1 %v3877_v35 }
 0x272   :  { %2909 = vmatprep.subr.mxu1 %v3084_v0  ;;  %v1506_v60 = vand.u32 4294901760, %v1505_v8 }
 0x273   :  { %2910 = vmatpush3.msra.mxu1 %v3879_v40 }
 0x274   :  { %2911 = vmatprep.subr.mxu1 %v3084_v0  ;;  %2831 = vmatmul.mubr.f32.vlgmr.msra.gmra.mxu0 %v1506_v60 }
 0x275   :  { %2869 = vmatpush3.msra.mxu0 %v3872_v25  ;;  %2912 = vmatpush3.msra.mxu1 %v3881_v43  ;;  %v4252_v25 = vand.u32 4294901760, %v4019_v32 }
 0x276   :  { %2870 = vmatprep.subr.mxu0 %v3084_v0  ;;  %2913 = vmatprep.subr.mxu1 %v3084_v0 }
 0x277   :  { %2871 = vmatpush3.msra.mxu0 %v3886_v59  ;;  %2914 = vmatpush3.msra.mxu1 %v3889_v61 }
 0x278   :  { %2872 = vmatprep.subr.mxu0 %v3084_v0  ;;  %2915 = vmatprep.subr.mxu1 %v3084_v0 }
 0x279   :  { %2873 = vmatpush3.msra.mxu0 %v3894_v63  ;;  %2916 = vmatpush3.msra.mxu1 %v3891_v62 }
 0x27a   :  { %2874 = vmatprep.subr.mxu0 %v3084_v0  ;;  %2917 = vmatprep.subr.mxu1 %v3084_v0 }
 0x27b   :  { %2875 = vmatpush3.msra.mxu0 %v3897_v19  ;;  %2918 = vmatpush3.msra.mxu1 %v3903_v42 }
 0x27c   :  { %2876 = vmatprep.subr.mxu0 %v3084_v0  ;;  %2919 = vmatprep.subr.mxu1 %v3084_v0 }
 0x27d   :  { %2877 = vmatpush3.msra.mxu0 %v3900_v31  ;;  %2920 = vmatpush3.msra.mxu1 %v3958_v7  ;;  %v2071_v31 = vld [vmem:[%s4237_s6] ss:$0 sm:$0xff] }
 0x27e   :  { %2878 = vmatprep.subr.mxu0 %v3084_v0  ;;  %2921 = vmatprep.subr.mxu1 %v3084_v0 }
 0x27f   :  { %2879 = vmatpush3.msra.mxu0 %v3910_v14  ;;  %2922 = vmatpush3.msra.mxu1 %v3966_v6 }
 0x280   :  { %2880 = vmatprep.subr.mxu0 %v3084_v0  ;;  %2923 = vmatprep.subr.mxu1 %v3084_v0 }
 0x281   :  { %2881 = vmatpush3.msra.mxu0 %v3914_v33  ;;  %2924 = vmatpush3.msra.mxu1 %v3975_v23 }
 0x282   :  { %2882 = vmatprep.subr.mxu0 %v3084_v0  ;;  %2925 = vmatprep.subr.mxu1 %v3084_v0 }
 0x283   :  { %2883 = vmatpush3.msra.mxu0 %v3926_v30  ;;  %2926 = vmatpush3.msra.mxu1 %v3987_v11 }
 0x284   :  { %2884 = vmatprep.subr.mxu0 %v3084_v0  ;;  %2927 = vmatprep.subr.mxu1 %v3084_v0 }
 0x285   :  { %2885 = vmatpush3.msra.mxu0 %v3964_v4  ;;  %2928 = vmatpush3.msra.mxu1 %v4001_v34 }
 0x286   :  { %2886 = vmatprep.subr.mxu0 %v3084_v0  ;;  %2929 = vmatprep.subr.mxu1 %v3084_v0 }
 0x287   :  { %2887 = vmatpush3.msra.mxu0 %v3973_v37  ;;  %2930 = vmatpush3.msra.mxu1 %v4008_v12 }
 0x288   :  { %2888 = vmatprep.subr.mxu0 %v3084_v0  ;;  %2931 = vmatprep.subr.mxu1 %v3084_v0 }
 0x289   :  { %2889 = vmatpush3.msra.mxu0 %v3985_v10  ;;  %2932 = vmatpush3.msra.mxu1 %v4021_v54 }
 0x28a   :  { %2890 = vmatprep.subr.mxu0 %v3084_v0  ;;  %2933 = vmatprep.subr.mxu1 %v3084_v0 }
 0x28b   :  { %2891 = vmatpush3.msra.mxu0 %v3997_v29  ;;  %2934 = vmatpush3.msra.mxu1 %v4031_v44 }
 0x28c   :  { %2892 = vmatprep.subr.mxu0 %v3084_v0  ;;  %2936 = vmatmul.mubr.f32.vlgmr.msra.gmra.mxu1 %v1504_v46 }
 0x28d   :  { %2973 = vmatprep.subr.mxu1 %v3084_v0  ;;  %2893 = vmatpush3.msra.mxu0 %v4012_v15 }
 0x28e   :  { %2974 = vmatpush3.msra.mxu1 %v3869_v20  ;;  %2894 = vmatprep.subr.mxu0 %v3084_v0  ;;  %v4251_v20 = vand.u32 4294901760, %v4012_v15 }
 0x28f   :  { %2975 = vmatprep.subr.mxu1 %v3084_v0  ;;  %2895 = vmatpush3.msra.mxu0 %v4019_v32 }
 0x290   :  { %2976 = vmatpush3.msra.mxu1 %v3874_v27  ;;  %2896 = vmatprep.subr.mxu0 %v3084_v0  ;;  %v4253_v27 = vand.u32 4294901760, %v4029_v38 }
 0x291   :  { %2977 = vmatprep.subr.mxu1 %v3084_v0  ;;  %2897 = vmatpush3.msra.mxu0 %v4029_v38 }
 0x292   :  { %2978 = vmatpush3.msra.mxu1 %v3877_v35  ;;  %2898 = vmatprep.subr.mxu0 %v3084_v0  ;;  %v4254_v35 = vand.u32 4294901760, %v4044_v22 }
 0x293   :  { %2979 = vmatprep.subr.mxu1 %v3084_v0  ;;  %2899 = vmatpush3.msra.mxu0 %v4044_v22 }
 0x294   :  { %2900 = vmatprep.mubr.msk.f32.mxu0 %vm3085_vm0, %v3084_v0  ;;  %2980 = vmatpush3.msra.mxu1 %v3879_v40 }
 0x295   :  { %2901 = vmatmul.mubr.f32.vlgmr.msra.gmra.mxu0 %v4067_v1  ;;  %2938 = vmatprep.subr.mxu0 %v3084_v0 }
 0x296   :  { %2981 = vmatprep.subr.mxu1 %v3084_v0  ;;  %2939 = vmatpush3.msra.mxu0 %v1515_v57 }
 0x297   :  { %2982 = vmatpush3.msra.mxu1 %v3881_v43  ;;  %2940 = vmatprep.subr.mxu0 %v3084_v0 }
 0x298   :  { %2983 = vmatprep.subr.mxu1 %v3084_v0  ;;  %2941 = vmatpush3.msra.mxu0 %v1522_v2 }
 0x299   :  { %2984 = vmatpush3.msra.mxu1 %v3889_v61  ;;  %2942 = vmatprep.subr.mxu0 %v3084_v0 }
 0x29a   :  { %2985 = vmatprep.subr.mxu1 %v3084_v0  ;;  %2943 = vmatpush3.msra.mxu0 %v1529_v41 }
 0x29b   :  { %2986 = vmatpush3.msra.mxu1 %v3891_v62  ;;  %2944 = vmatprep.subr.mxu0 %v3084_v0 }
 0x29c   :  { %2987 = vmatprep.subr.mxu1 %v3084_v0  ;;  %2945 = vmatpush3.msra.mxu0 %v1536_v50 }
 0x29d   :  { %2988 = vmatpush3.msra.mxu1 %v3903_v42  ;;  %2946 = vmatprep.subr.mxu0 %v3084_v0 }
 0x29e   :  { %2989 = vmatprep.subr.mxu1 %v3084_v0  ;;  %2947 = vmatpush3.msra.mxu0 %v1543_v51 }
 0x29f   :  { %2990 = vmatpush3.msra.mxu1 %v3958_v7  ;;  %2948 = vmatprep.subr.mxu0 %v3084_v0 }
 0x2a0   :  { %2991 = vmatprep.subr.mxu1 %v3084_v0  ;;  %2949 = vmatpush3.msra.mxu0 %v1550_v16 }
 0x2a1   :  { %2992 = vmatpush3.msra.mxu1 %v3966_v6  ;;  %2950 = vmatprep.subr.mxu0 %v3084_v0 }
 0x2a2   :  { %2993 = vmatprep.subr.mxu1 %v3084_v0  ;;  %2951 = vmatpush3.msra.mxu0 %v1557_v49 }
 0x2a3   :  { %2994 = vmatpush3.msra.mxu1 %v3975_v23  ;;  %2952 = vmatprep.subr.mxu0 %v3084_v0 }
 0x2a4   :  { %2995 = vmatprep.subr.mxu1 %v3084_v0  ;;  %2953 = vmatpush3.msra.mxu0 %v1564_v36 }
 0x2a5   :  { %2996 = vmatpush3.msra.mxu1 %v3987_v11  ;;  %2954 = vmatprep.subr.mxu0 %v3084_v0 }
 0x2a6   :  { %2997 = vmatprep.subr.mxu1 %v3084_v0  ;;  %2955 = vmatpush3.msra.mxu0 %v1571_v3 }
 0x2a7   :  { %2998 = vmatpush3.msra.mxu1 %v4001_v34  ;;  %2956 = vmatprep.subr.mxu0 %v3084_v0 }
 0x2a8   :  { %2999 = vmatprep.subr.mxu1 %v3084_v0  ;;  %2957 = vmatpush3.msra.mxu0 %v1578_v5 }
 0x2a9   :  { %3000 = vmatpush3.msra.mxu1 %v4008_v12  ;;  %2958 = vmatprep.subr.mxu0 %v3084_v0 }
 0x2aa   :  { %3001 = vmatprep.subr.mxu1 %v3084_v0  ;;  %2959 = vmatpush3.msra.mxu0 %v1585_v28 }
 0x2ab   :  { %3002 = vmatpush3.msra.mxu1 %v4021_v54  ;;  %2960 = vmatprep.subr.mxu0 %v3084_v0 }
 0x2ac   :  { %3003 = vmatprep.subr.mxu1 %v3084_v0  ;;  %2961 = vmatpush3.msra.mxu0 %v1592_v52 }
 0x2ad   :  { %3004 = vmatpush3.msra.mxu1 %v4031_v44  ;;  %3005 = vmatprep.mubr.msk.f32.mxu1 %vm3085_vm0, %v3084_v0 }
 0x2ae   :  { %2962 = vmatprep.subr.mxu0 %v3084_v0  ;;  %3006 = vmatmul.mubr.f32.vlgmr.msra.gmra.mxu1 %v4064_v53 }
 0x2af   :  { %2963 = vmatpush3.msra.mxu0 %v4251_v20  ;;  %2970 = vmatprep.mubr.msk.f32.mxu0 %vm3085_vm0, %v3084_v0 }
 0x2b0   :  { %2964 = vmatprep.subr.mxu0 %v3084_v0 }
 0x2b1   :  { %2965 = vmatpush3.msra.mxu0 %v4252_v25 }
 0x2b2   :  { %2966 = vmatprep.subr.mxu0 %v3084_v0 }
 0x2b3   :  { %2967 = vmatpush3.msra.mxu0 %v4253_v27 }
 0x2b4   :  { %2968 = vmatprep.subr.mxu0 %v3084_v0 }
 0x2b5   :  { %2969 = vmatpush3.msra.mxu0 %v4254_v35 }
 0x2b6   :  { %2971 = vmatmul.mubr.f32.vlgmr.msra.gmra.mxu0 %v4064_v53 }
 0x32c   :  { %v1659_v40 = vpop.f32.mrf.mxu1 }
 0x32e   :  { %v2867_v43 = vpop.f32.mrf.mxu1 }
 0x334   :  { %v1508_v57 = vpop.f32.mrf.mxu0 }
 0x335   :  { %v1509_v42 = vadd.f32 %v2071_v31, %v1508_v57 }
 0x336   :  { %v2832_v59 = vpop.f32.mrf.mxu0 }
 0x337   :  { %v1660_v0 = vadd.f32 %v1659_v40, %v1509_v42 }
 0x34c   :  { %v1852_v61 = vpop.f32.mrf.mxu1 }
 0x34e   :  { %v2937_v62 = vpop.f32.mrf.mxu1 }
 0x355   :  { %v1763_v63 = vpop.f32.mrf.mxu0 }
 0x356   :  { %v1764_v33 = vadd.f32 %v1763_v63, %v1660_v0 }
 0x357   :  { %v2902_v19 = vpop.f32.mrf.mxu0 }
 0x358   :  { %v1853_v41 = vadd.f32 %v1852_v61, %v1764_v33 }
 0x36e   :  { %v2058_v2 = vpop.f32.mrf.mxu1 }
 0x370   :  { %v3007_v14 = vpop.f32.mrf.mxu1 }
 0x376   :  { %v1971_v50 = vpop.f32.mrf.mxu0 }
 0x377   :  { %v1972_v51 = vadd.f32 %v1971_v50, %v1853_v41 }
 0x378   :  { %v2972_v16 = vpop.f32.mrf.mxu0 }
 0x379   :  { %v2059_v30 = vadd.f32 %v2058_v2, %v1972_v51 }
 0x37b   :  { %2062 = vst [vmem:[%s4238_s7] sm:$0xff] %v2059_v30 }
 0x37c   :  { %2067 = vsyncpa [#allocation3], 1 }
 0x37d   :  { %2068 = vsyncpa [#allocation5], 1 }

</bundles_post_ra>
